<compile_context>
chip_gen: v5e
topology: v5e:2x2
jax: 0.10.0
libtpu: 0.0.40
codegen_flags: <defaults>
</compile_context>

<pallas_src>
import functools

import jax
import jax.numpy as jnp
from jax.experimental import pallas as pl
from jax.experimental.pallas import tpu as pltpu

_LANE = 128


def _round_up(x, m):
    return (x + m - 1) // m * m


def _pad2d(x, rows, cols, dtype):
    buf = jnp.zeros((rows, cols), dtype)
    return buf.at[: x.shape[0], : x.shape[1]].set(x.astype(dtype))


def _fused_gcn_kernel(adj_ref, z_ref, w1_ref, w2_ref, b1_ref, b2_ref,
                      out_ref, acc_ref, h_ref, s2_ref, *, tm, tk):
    p = pl.program_id(0)    # 0: layer-1 aggregation, 1: layer-2 aggregation
    i = pl.program_id(1)    # adj row tile == output row tile
    k = pl.program_id(2)    # adj column tile (reduction axis, innermost)
    nk = pl.num_programs(2)

    @pl.when(k == 0)
    def _init():
        acc_ref[...] = jnp.zeros_like(acc_ref)

    @pl.when(p == 0)
    def _layer1_step():
        # Layer 1 re-associated as (A @ Z) @ W1  (in_features < out_features):
        # the N x N GEMM runs against z directly; W1 is applied once per row tile.
        koff = pl.multiple_of(k * tk, tk)
        acc_ref[...] += jnp.dot(adj_ref[...], z_ref[pl.ds(koff, tk), :],
                                preferred_element_type=jnp.float32)

    @pl.when(p == 1)
    def _layer2_step():
        koff = pl.multiple_of(k * tk, tk)

        # Materialize s2 = H @ W2 exactly once (first row tile of phase 1), so the
        # inner loop stays a pure adj-tile x support MXU push for every other tile.
        @pl.when(i == 0)
        def _make_support():
            s2_ref[pl.ds(koff, tk), :] = jnp.dot(
                h_ref[pl.ds(koff, tk), :], w2_ref[...],
                preferred_element_type=jnp.float32).astype(s2_ref.dtype)

        acc_ref[...] += jnp.dot(adj_ref[...], s2_ref[pl.ds(koff, tk), :],
                                preferred_element_type=jnp.float32)

    @pl.when(k == nk - 1)
    def _finalize():
        ioff = pl.multiple_of(i * tm, tm)

        @pl.when(p == 0)
        def _store_h():
            h = jnp.dot(acc_ref[...].astype(jnp.bfloat16), w1_ref[...],
                        preferred_element_type=jnp.float32) + b1_ref[...]
            h_ref[pl.ds(ioff, tm), :] = jnp.maximum(h, 0.0).astype(h_ref.dtype)

        @pl.when(p == 1)
        def _store_out():
            out_ref[...] = (acc_ref[...] + b2_ref[...]).astype(out_ref.dtype)


def gcn_decoder_forward(z, adj, params, dropout_rate=0.5, training=False, *, tile=256):
    """Eval-mode forward of GCNDecoder: dc2(relu(dc1(z, adj)), adj)."""
    if training and dropout_rate > 0.0:
        # TODO(synk): training-mode dropout (pltpu.prng_seed/prng_random_bits mask) not implemented.
        raise NotImplementedError("only eval-mode (no-dropout) forward is implemented")

    w1, b1, w2, b2 = params
    n, n_emb = z.shape
    n_hidden = w1.shape[1]
    n_feature = w2.shape[1]

    # One lane-dense padded feature width shared by every operand / scratch.
    feat = max(_round_up(n_emb, _LANE), _round_up(n_hidden, _LANE),
               _round_up(n_feature, _LANE))
    tm = tk = min(tile, _round_up(n, _LANE))
    n_pad = _round_up(n, max(tm, tk))

    # bf16 for the HBM-dominant operands (adj) and MXU inputs; f32 biases.
    adj_p = _pad2d(adj, n_pad, n_pad, jnp.bfloat16)
    z_p = _pad2d(z, n_pad, feat, jnp.bfloat16)
    w1_p = _pad2d(w1, feat, feat, jnp.bfloat16)
    w2_p = _pad2d(w2, feat, feat, jnp.bfloat16)
    b1_p = _pad2d(b1.reshape(1, -1), 1, feat, jnp.float32)
    b2_p = _pad2d(b2.reshape(1, -1), 1, feat, jnp.float32)

    grid = (2, n_pad // tm, n_pad // tk)
    const = lambda p_, i_, k_: (0, 0)

    grid_spec = pltpu.PrefetchScalarGridSpec(
        num_scalar_prefetch=0,
        grid=grid,
        in_specs=[
            pl.BlockSpec((tm, tk), lambda p_, i_, k_: (i_, k_)),   # adj tile
            pl.BlockSpec((n_pad, feat), const),                    # z  (VMEM resident)
            pl.BlockSpec((feat, feat), const),                     # W1 (resident)
            pl.BlockSpec((feat, feat), const),                     # W2 (resident)
            pl.BlockSpec((1, feat), const),                        # b1
            pl.BlockSpec((1, feat), const),                        # b2
        ],
        out_specs=pl.BlockSpec((tm, feat), lambda p_, i_, k_: (i_, 0)),
        scratch_shapes=[
            pltpu.VMEM((tm, feat), jnp.float32),      # f32 accumulator
            pltpu.VMEM((n_pad, feat), jnp.bfloat16),  # h = relu(layer1)  (never hits HBM)
            pltpu.VMEM((n_pad, feat), jnp.bfloat16),  # s2 = h @ W2
        ],
    )

    # VMEM budget from the chosen tiles (double-buffered inputs/output + scratch).
    vmem_bytes = (2 * tm * tk * 2            # adj tile (bf16, double buffered)
                  + 2 * n_pad * feat * 2     # z
                  + 2 * 2 * feat * feat * 2  # W1, W2
                  + 2 * 2 * feat * 4         # b1, b2
                  + 2 * tm * feat * 4        # out tile
                  + tm * feat * 4            # accumulator
                  + 2 * n_pad * feat * 2)    # h, s2 scratch
    vmem_limit = int(min(64 * 2**20, max(2 * vmem_bytes, 16 * 2**20)))

    flops = (2 * n_pad * n_pad * feat        # A @ Z
             + 2 * n_pad * feat * feat       # (.) @ W1
             + 2 * n_pad * feat * feat       # H @ W2
             + 2 * n_pad * n_pad * feat)     # A @ S2
    bytes_accessed = (2 * n_pad * n_pad * 2  # adj streamed once per layer (bf16)
                      + n_pad * feat * 2 + 2 * feat * feat * 2 + 2 * feat * 4
                      + n_pad * feat * 4)    # output

    kernel = functools.partial(_fused_gcn_kernel, tm=tm, tk=tk)
    out_p = pl.pallas_call(
        kernel,
        out_shape=jax.ShapeDtypeStruct((n_pad, feat), jnp.float32),
        grid_spec=grid_spec,
        compiler_params=pltpu.CompilerParams(
            # Phase 1 reads VMEM scratch written by phase 0 -> all axes sequential.
            dimension_semantics=("arbitrary", "arbitrary", "arbitrary"),
            vmem_limit_bytes=vmem_limit,
        ),
        cost_estimate=pl.CostEstimate(flops=flops, transcendentals=0,
                                      bytes_accessed=bytes_accessed),
    )(adj_p, z_p, w1_p, w2_p, b1_p, b2_p)

    return out_p[:n, :n_feature]


def init_params(key, n_emb, n_hidden, n_feature):
    # GraphConvolution init: uniform(-stdv, stdv), stdv = 1/sqrt(out_features)
    k1, k2, k3, k4 = jax.random.split(key, 4)
    s1 = 1.0 / jnp.sqrt(jnp.float32(n_hidden))
    s2 = 1.0 / jnp.sqrt(jnp.float32(n_feature))
    w1 = jax.random.uniform(k1, (n_emb, n_hidden), jnp.float32, -s1, s1)
    b1 = jax.random.uniform(k2, (1, n_hidden), jnp.float32, -s1, s1)
    w2 = jax.random.uniform(k3, (n_hidden, n_feature), jnp.float32, -s2, s2)
    b2 = jax.random.uniform(k4, (1, n_feature), jnp.float32, -s2, s2)
    return w1, b1, w2, b2


if __name__ == "__main__":
    key = jax.random.PRNGKey(0)
    kz, ka, kp = jax.random.split(key, 3)

    # Small shapes consistent with the module; N=512 exercises a (2, 2, 2) grid.
    n_nodes, n_emb, n_hidden, n_feature = 512, 32, 64, 16

    z = jax.random.normal(kz, (n_nodes, n_emb), jnp.float32)

    # Symmetric row-normalized adjacency with self-loops (dense).
    a_raw = (jax.random.uniform(ka, (n_nodes, n_nodes)) < 0.02).astype(jnp.float32)
    a_sym = jnp.maximum(a_raw, a_raw.T) + jnp.eye(n_nodes, dtype=jnp.float32)
    deg = jnp.sum(a_sym, axis=1, keepdims=True)
    adj = a_sym / deg

    params = init_params(kp, n_emb, n_hidden, n_feature)

    out = gcn_decoder_forward(z, adj, params, dropout_rate=0.5, training=False)
    out = jax.block_until_ready(out)

    # Reference mirroring the kernel numerics (bf16 MXU inputs, f32 accumulation).
    w1, b1, w2, b2 = params
    c = lambda x: x.astype(jnp.bfloat16).astype(jnp.float32)
    t_ref = c(adj) @ c(z)
    h_ref = jnp.maximum(c(t_ref) @ c(w1) + b1, 0.0)
    s2_ref = c(c(h_ref) @ c(w2))
    out_ref = c(adj) @ s2_ref + b2

    assert out.shape == (n_nodes, n_feature)
    assert jnp.allclose(out, out_ref, atol=5e-3, rtol=5e-3), (
        float(jnp.max(jnp.abs(out - out_ref))))

    print("KERNEL_OK")
</pallas_src>

<mosaic_0001>
module attributes {stable_mosaic.version = 11 : i64} {
  func.func @_fused_gcn_kernel(%arg0: i32, %arg1: i32, %arg2: i32, %arg3: memref<256x256xbf16, #tpu.memory_space<vmem>>, %arg4: memref<512x128xbf16, #tpu.memory_space<vmem>>, %arg5: memref<128x128xbf16, #tpu.memory_space<vmem>>, %arg6: memref<128x128xbf16, #tpu.memory_space<vmem>>, %arg7: memref<1x128xf32, #tpu.memory_space<vmem>>, %arg8: memref<1x128xf32, #tpu.memory_space<vmem>>, %arg9: memref<256x128xf32, #tpu.memory_space<vmem>>, %arg10: memref<256x128xf32, #tpu.memory_space<vmem>>, %arg11: memref<512x128xbf16, #tpu.memory_space<vmem>>, %arg12: memref<512x128xbf16, #tpu.memory_space<vmem>>) attributes {dimension_semantics = [#tpu.dimension_semantics<arbitrary>, #tpu.dimension_semantics<arbitrary>, #tpu.dimension_semantics<arbitrary>], iteration_bounds = array<i64: 2, 2, 2>, scalar_prefetch = 0 : i64, scratch_operands = 3 : i64, tpu.core_type = #tpu.core_type<tc>, window_params = [{transform_indices = @transform_0, window_bounds = array<i64: 256, 256>}, {pipeline_mode = #tpu.pipeline_mode<synchronous>, transform_indices = @transform_1, window_bounds = array<i64: 512, 128>}, {pipeline_mode = #tpu.pipeline_mode<synchronous>, transform_indices = @transform_2, window_bounds = array<i64: 128, 128>}, {pipeline_mode = #tpu.pipeline_mode<synchronous>, transform_indices = @transform_3, window_bounds = array<i64: 128, 128>}, {pipeline_mode = #tpu.pipeline_mode<synchronous>, transform_indices = @transform_4, window_bounds = array<i64: 1, 128>}, {pipeline_mode = #tpu.pipeline_mode<synchronous>, transform_indices = @transform_5, window_bounds = array<i64: 1, 128>}, {transform_indices = @transform_6, window_bounds = array<i64: 256, 128>}]} {
    %c0_i32 = arith.constant 0 : i32
    %0 = arith.cmpi eq, %arg2, %c0_i32 : i32
    %1 = arith.extui %0 : i1 to i32
    %c0_i32_0 = arith.constant 0 : i32
    %2 = arith.cmpi ne, %1, %c0_i32_0 : i32
    scf.if %2 {
      %cst = arith.constant 0.000000e+00 : f32
      %12 = vector.broadcast %cst : f32 to vector<256x128xf32>
      %c0 = arith.constant 0 : index
      %c0_6 = arith.constant 0 : index
      %13 = vector.load %arg10[%c0, %c0_6] : memref<256x128xf32, #tpu.memory_space<vmem>>, vector<256x128xf32>
      tpu.vector_store %arg10[%c0, %c0_6], %12 {strides = array<i32>} : memref<256x128xf32, #tpu.memory_space<vmem>>, vector<256x128xf32>,
    } else {
    }
    %c0_i32_1 = arith.constant 0 : i32
    %3 = arith.cmpi eq, %arg0, %c0_i32_1 : i32
    %4 = arith.extui %3 : i1 to i32
    %c0_i32_2 = arith.constant 0 : i32
    %5 = arith.cmpi ne, %4, %c0_i32_2 : i32
    scf.if %5 {
      %c256_i32 = arith.constant 256 : i32
      %12 = arith.muli %arg2, %c256_i32 : i32
      %13 = tpu.assume_multiple %12, 256 : i32
      %c0 = arith.constant 0 : index
      %c0_6 = arith.constant 0 : index
      %14 = vector.load %arg10[%c0, %c0_6] : memref<256x128xf32, #tpu.memory_space<vmem>>, vector<256x128xf32>
      %c0_7 = arith.constant 0 : index
      %c0_8 = arith.constant 0 : index
      %15 = vector.load %arg3[%c0_7, %c0_8] : memref<256x256xbf16, #tpu.memory_space<vmem>>, vector<256x256xbf16>
      %16 = arith.index_cast %13 : i32 to index
      %c0_9 = arith.constant 0 : index
      %17 = vector.load %arg4[%16, %c0_9] : memref<512x128xbf16, #tpu.memory_space<vmem>>, vector<256x128xbf16>
      %cst = arith.constant dense<0.000000e+00> : vector<256x128xf32>
      %18 = tpu.matmul %15, %17, %cst {dimension_numbers = #tpu.dot_dimension_numbers<[1], [0], [0], [1], [0, 0, 1, 1], [], []>} : vector<256x256xbf16>, vector<256x128xbf16>, vector<256x128xf32> -> vector<256x128xf32>
      %19 = arith.addf %14, %18 : vector<256x128xf32>
      %c0_10 = arith.constant 0 : index
      %c0_11 = arith.constant 0 : index
      %20 = vector.load %arg10[%c0_10, %c0_11] : memref<256x128xf32, #tpu.memory_space<vmem>>, vector<256x128xf32>
      tpu.vector_store %arg10[%c0_10, %c0_11], %19 {strides = array<i32>} : memref<256x128xf32, #tpu.memory_space<vmem>>, vector<256x128xf32>,
    } else {
    }
    %c1_i32 = arith.constant 1 : i32
    %6 = arith.cmpi eq, %arg0, %c1_i32 : i32
    %7 = arith.extui %6 : i1 to i32
    %c0_i32_3 = arith.constant 0 : i32
    %8 = arith.cmpi ne, %7, %c0_i32_3 : i32
    scf.if %8 {
      %c256_i32 = arith.constant 256 : i32
      %12 = arith.muli %arg2, %c256_i32 : i32
      %13 = tpu.assume_multiple %12, 256 : i32
      %c0_i32_6 = arith.constant 0 : i32
      %14 = arith.cmpi eq, %arg1, %c0_i32_6 : i32
      %15 = arith.extui %14 : i1 to i32
      %c0_i32_7 = arith.constant 0 : i32
      %16 = arith.cmpi ne, %15, %c0_i32_7 : i32
      scf.if %16 {
        %24 = arith.index_cast %13 : i32 to index
        %c0_14 = arith.constant 0 : index
        %25 = vector.load %arg11[%24, %c0_14] : memref<512x128xbf16, #tpu.memory_space<vmem>>, vector<256x128xbf16>
        %c0_15 = arith.constant 0 : index
        %c0_16 = arith.constant 0 : index
        %26 = vector.load %arg6[%c0_15, %c0_16] : memref<128x128xbf16, #tpu.memory_space<vmem>>, vector<128x128xbf16>
        %cst_17 = arith.constant dense<0.000000e+00> : vector<256x128xf32>
        %27 = tpu.matmul %25, %26, %cst_17 {dimension_numbers = #tpu.dot_dimension_numbers<[1], [0], [0], [1], [0, 0, 1, 1], [], []>} : vector<256x128xbf16>, vector<128x128xbf16>, vector<256x128xf32> -> vector<256x128xf32>
        %28 = arith.truncf %27 : vector<256x128xf32> to vector<256x128xbf16>
        %29 = arith.index_cast %13 : i32 to index
        %c0_18 = arith.constant 0 : index
        %30 = vector.load %arg12[%29, %c0_18] : memref<512x128xbf16, #tpu.memory_space<vmem>>, vector<256x128xbf16>
        tpu.vector_store %arg12[%29, %c0_18], %28 {strides = array<i32>} : memref<512x128xbf16, #tpu.memory_space<vmem>>, vector<256x128xbf16>,
      } else {
      }
      %c0 = arith.constant 0 : index
      %c0_8 = arith.constant 0 : index
      %17 = vector.load %arg10[%c0, %c0_8] : memref<256x128xf32, #tpu.memory_space<vmem>>, vector<256x128xf32>
      %c0_9 = arith.constant 0 : index
      %c0_10 = arith.constant 0 : index
      %18 = vector.load %arg3[%c0_9, %c0_10] : memref<256x256xbf16, #tpu.memory_space<vmem>>, vector<256x256xbf16>
      %19 = arith.index_cast %13 : i32 to index
      %c0_11 = arith.constant 0 : index
      %20 = vector.load %arg12[%19, %c0_11] : memref<512x128xbf16, #tpu.memory_space<vmem>>, vector<256x128xbf16>
      %cst = arith.constant dense<0.000000e+00> : vector<256x128xf32>
      %21 = tpu.matmul %18, %20, %cst {dimension_numbers = #tpu.dot_dimension_numbers<[1], [0], [0], [1], [0, 0, 1, 1], [], []>} : vector<256x256xbf16>, vector<256x128xbf16>, vector<256x128xf32> -> vector<256x128xf32>
      %22 = arith.addf %17, %21 : vector<256x128xf32>
      %c0_12 = arith.constant 0 : index
      %c0_13 = arith.constant 0 : index
      %23 = vector.load %arg10[%c0_12, %c0_13] : memref<256x128xf32, #tpu.memory_space<vmem>>, vector<256x128xf32>
      tpu.vector_store %arg10[%c0_12, %c0_13], %22 {strides = array<i32>} : memref<256x128xf32, #tpu.memory_space<vmem>>, vector<256x128xf32>,
    } else {
    }
    %c1_i32_4 = arith.constant 1 : i32
    %9 = arith.cmpi eq, %arg2, %c1_i32_4 : i32
    %10 = arith.extui %9 : i1 to i32
    %c0_i32_5 = arith.constant 0 : i32
    %11 = arith.cmpi ne, %10, %c0_i32_5 : i32
    scf.if %11 {
      %c256_i32 = arith.constant 256 : i32
      %12 = arith.muli %arg1, %c256_i32 : i32
      %13 = tpu.assume_multiple %12, 256 : i32
      %c0_i32_6 = arith.constant 0 : i32
      %14 = arith.cmpi eq, %arg0, %c0_i32_6 : i32
      %15 = arith.extui %14 : i1 to i32
      %c0_i32_7 = arith.constant 0 : i32
      %16 = arith.cmpi ne, %15, %c0_i32_7 : i32
      scf.if %16 {
        %c0 = arith.constant 0 : index
        %c0_10 = arith.constant 0 : index
        %20 = vector.load %arg10[%c0, %c0_10] : memref<256x128xf32, #tpu.memory_space<vmem>>, vector<256x128xf32>
        %21 = arith.truncf %20 : vector<256x128xf32> to vector<256x128xbf16>
        %c0_11 = arith.constant 0 : index
        %c0_12 = arith.constant 0 : index
        %22 = vector.load %arg5[%c0_11, %c0_12] : memref<128x128xbf16, #tpu.memory_space<vmem>>, vector<128x128xbf16>
        %cst = arith.constant dense<0.000000e+00> : vector<256x128xf32>
        %23 = tpu.matmul %21, %22, %cst {dimension_numbers = #tpu.dot_dimension_numbers<[1], [0], [0], [1], [0, 0, 1, 1], [], []>} : vector<256x128xbf16>, vector<128x128xbf16>, vector<256x128xf32> -> vector<256x128xf32>
        %c0_13 = arith.constant 0 : index
        %c0_14 = arith.constant 0 : index
        %24 = vector.load %arg7[%c0_13, %c0_14] : memref<1x128xf32, #tpu.memory_space<vmem>>, vector<1x128xf32>
        %25 = vector.broadcast %24 : vector<1x128xf32> to vector<256x128xf32>
        %26 = arith.addf %23, %25 : vector<256x128xf32>
        %cst_15 = arith.constant 0.000000e+00 : f32
        %27 = vector.broadcast %cst_15 : f32 to vector<256x128xf32>
        %28 = arith.maximumf %26, %27 : vector<256x128xf32>
        %29 = arith.truncf %28 : vector<256x128xf32> to vector<256x128xbf16>
        %30 = arith.index_cast %13 : i32 to index
        %c0_16 = arith.constant 0 : index
        %31 = vector.load %arg11[%30, %c0_16] : memref<512x128xbf16, #tpu.memory_space<vmem>>, vector<256x128xbf16>
        tpu.vector_store %arg11[%30, %c0_16], %29 {strides = array<i32>} : memref<512x128xbf16, #tpu.memory_space<vmem>>, vector<256x128xbf16>,
      } else {
      }
      %c1_i32_8 = arith.constant 1 : i32
      %17 = arith.cmpi eq, %arg0, %c1_i32_8 : i32
      %18 = arith.extui %17 : i1 to i32
      %c0_i32_9 = arith.constant 0 : i32
      %19 = arith.cmpi ne, %18, %c0_i32_9 : i32
      scf.if %19 {
        %c0 = arith.constant 0 : index
        %c0_10 = arith.constant 0 : index
        %20 = vector.load %arg10[%c0, %c0_10] : memref<256x128xf32, #tpu.memory_space<vmem>>, vector<256x128xf32>
        %c0_11 = arith.constant 0 : index
        %c0_12 = arith.constant 0 : index
        %21 = vector.load %arg8[%c0_11, %c0_12] : memref<1x128xf32, #tpu.memory_space<vmem>>, vector<1x128xf32>
        %22 = vector.broadcast %21 : vector<1x128xf32> to vector<256x128xf32>
        %23 = arith.addf %20, %22 : vector<256x128xf32>
        %c0_13 = arith.constant 0 : index
        %c0_14 = arith.constant 0 : index
        %24 = vector.load %arg9[%c0_13, %c0_14] : memref<256x128xf32, #tpu.memory_space<vmem>>, vector<256x128xf32>
        tpu.vector_store %arg9[%c0_13, %c0_14], %23 {strides = array<i32>} : memref<256x128xf32, #tpu.memory_space<vmem>>, vector<256x128xf32>,
      } else {
      }
    } else {
    }
    return
  }
  func.func @transform_0(%arg0: i32, %arg1: i32, %arg2: i32) -> (i32, i32) {
    %c0_i32 = arith.constant 0 : i32
    return %arg1, %arg2 : i32, i32
  }
  func.func @transform_1(%arg0: i32, %arg1: i32, %arg2: i32) -> (i32, i32) {
    %c0_i32 = arith.constant 0 : i32
    %c0_i32_0 = arith.constant 0 : i32
    %c0_i32_1 = arith.constant 0 : i32
    return %c0_i32, %c0_i32_0 : i32, i32
  }
  func.func @transform_2(%arg0: i32, %arg1: i32, %arg2: i32) -> (i32, i32) {
    %c0_i32 = arith.constant 0 : i32
    %c0_i32_0 = arith.constant 0 : i32
    %c0_i32_1 = arith.constant 0 : i32
    return %c0_i32, %c0_i32_0 : i32, i32
  }
  func.func @transform_3(%arg0: i32, %arg1: i32, %arg2: i32) -> (i32, i32) {
    %c0_i32 = arith.constant 0 : i32
    %c0_i32_0 = arith.constant 0 : i32
    %c0_i32_1 = arith.constant 0 : i32
    return %c0_i32, %c0_i32_0 : i32, i32
  }
  func.func @transform_4(%arg0: i32, %arg1: i32, %arg2: i32) -> (i32, i32) {
    %c0_i32 = arith.constant 0 : i32
    %c0_i32_0 = arith.constant 0 : i32
    %c0_i32_1 = arith.constant 0 : i32
    return %c0_i32, %c0_i32_0 : i32, i32
  }
  func.func @transform_5(%arg0: i32, %arg1: i32, %arg2: i32) -> (i32, i32) {
    %c0_i32 = arith.constant 0 : i32
    %c0_i32_0 = arith.constant 0 : i32
    %c0_i32_1 = arith.constant 0 : i32
    return %c0_i32, %c0_i32_0 : i32, i32
  }
  func.func @transform_6(%arg0: i32, %arg1: i32, %arg2: i32) -> (i32, i32) {
    %c0_i32 = arith.constant 0 : i32
    %c0_i32_0 = arith.constant 0 : i32
    return %arg1, %c0_i32 : i32, i32
  }
}

</mosaic_0001>

<bundles_post_ra>
// kernel: tpu_custom_call.1
= control target key start
LH: loop header
LB: loop body
LE: loop exit
PB: predicated region body
PF: predicated region fallthrough
CT: control target
= control target key end

     0   :  { %s4534_s0 = inlined_call_operand.hbm [shape: bf16[512,512], index: 0, kind: input, shape index: {}]   ;;  %s4535_s1 = inlined_call_operand.hbm [shape: bf16[512,128], index: 1, kind: input, shape index: {}]   ;;  %s4536_s2 = inlined_call_operand.hbm [shape: bf16[128,128], index: 2, kind: input, shape index: {}]   ;;  %s4537_s3 = inlined_call_operand.hbm [shape: bf16[128,128], index: 3, kind: input, shape index: {}]   ;;  %s4538_s4 = inlined_call_operand.vmem [shape: f32[1,128], index: 4, kind: input, shape index: {}]   ;;  %s4539_s5 = inlined_call_operand.vmem [shape: f32[1,128], index: 5, kind: input, shape index: {}]   ;;  %s4540_s6 = inlined_call_operand.hbm [shape: f32[512,128], index: 6, kind: output, shape index: {}]  }
   0x1   :  { %4550 = sst [smem:[#allocation27_spill]] %s4535_s1 }
   0x2   :  { %4551 = sst [smem:[#allocation28_spill]] %s4536_s2 }
   0x3   :  { %4552 = sst [smem:[#allocation29_spill]] %s4537_s3 }
   0x4   :  { %4553 = sst [smem:[#allocation30_spill]] %s4538_s4 }
   0x5   :  { %4554 = sst [smem:[#allocation31_spill]] %s4539_s5 }
   0x6   :  { %4555 = sst [smem:[#allocation32_spill]] %s4540_s6 }
   0x7   :  { %11 = vsyncpa [#allocation6], 0 }
   0x8   :  { %13 = vsyncpa [#allocation6 + $0x1], 0 }
   0x9   :  { %14 = vsyncpa [#allocation9], 0 }
   0xa   :  { %15 = vsyncpa [#allocation12], 0 }
   0xb   :  { %16 = vsyncpa [#allocation7], 0 }
   0xc   :  { %18 = vsyncpa [#allocation7 + $0x1], 0  ;;  %s3933_s21 = smov 0   ;;  %s3935_s22 = smov 0  }
   0xd   :  { %s3937_s23 = smov 0   ;;  %s3939_s24 = smov 0  }
   0xe   :  { %s3941_s25 = smov 0   ;;  %s3943_s26 = smov 0  }
   0xf   :  { %s3945_s27 = smov 0   ;;  %s3947_s28 = smov 0  }
  0x10   :  { %s3949_s29 = smov 0   ;;  %s3951_s30 = smov 0  }
  0x11   :  { %s3953_s7 = smov 0   ;;  %s3955_s8 = smov 0  }
  0x12   :  { %s3957_s9 = smov 0  }
  0x13 LB: > { %4556 = sst [smem:[#allocation18_spill]] %s3837_s21  ;;  %s2510_s10 = sadd.s32 4294967295, %s3885_s9   ;;  %s3885_s9 = sphi %s3957_s9, %s24_s9   ;;  %s3881_s8 = sphi %s3955_s8, %s4588_s8   ;;  %s3877_s7 = sphi %s3953_s7, %s4598_s7   ;;  %s3873_s30 = sphi %s3951_s30, %s4597_s30   ;;  %s3869_s29 = sphi %s3949_s29, %s4596_s29   ;;  %s3865_s28 = sphi %s3947_s28, %s4595_s28   ;;  %s3861_s27 = sphi %s3945_s27, %s4594_s27   ;;  %s3857_s26 = sphi %s3943_s26, %s4584_s26   ;;  %s3853_s25 = sphi %s3941_s25, %s4593_s25   ;;  %s3849_s24 = sphi %s3939_s24, %s4592_s24   ;;  %s3845_s23 = sphi %s3937_s23, %s4591_s23   ;;  %s3841_s22 = sphi %s3935_s22, %s4590_s22   ;;  %s3837_s21 = sphi %s3933_s21, %s4589_s21  }
  0x14   : > { %4557 = sst [smem:[#allocation19_spill]] %s3857_s26  ;;  %s2511_s11 = sadd.s32 4294967294, %s3885_s9  }
  0x15   : > { %4558 = sst [smem:[#allocation20_spill]] %s3881_s8  ;;  %p65_p0 = scmp.ne.s32.totalorder %s3853_s25, %s3849_s24 }
  0x16   : > { %p3999_p1 = scmp.eq.s32.totalorder %s2510_s10, 0  ;;  %p193_p2 = scmp.ne.s32.totalorder %s3845_s23, %s3841_s22 }
  0x17   : > { %p194_p4 = scmp.eq.s32.totalorder %s2510_s10, 7  ;;  %p199_p5 = scmp.ne.s32.totalorder %s3841_s22, %s3837_s21 }
  0x18   : > { %p4008_p3 = por %p3999_p1, %p65_p0  ;;  %p200_p6 = scmp.eq.s32.totalorder %s2511_s11, 7 }
  0x19   : > { %p4014_p7 = por %p194_p4, %p193_p2  ;;  %p2512_p8 = scmp.ge.s32.totalorder %s3885_s9, 1 }
  0x1a   : > { %p4019_p9 = por %p200_p6, %p199_p5  ;;  %p207_p10 = scmp.lt.s32.totalorder %s3885_s9, 9 }
  0x1b   : > { %s4561_s15 = scalar_select %p4014_p7, 1, 0 }
  0x1c   : > { %s4563_s16 = scalar_select %p4019_p9, 1, 0 }
  0x1d   : > { %4562 = sst [smem:[#allocation21_spill]] %s4561_s15  ;;  %p4027_p11 = pnand %p2512_p8, %p207_p10 }
  0x1e   : > { %4564 = sst [smem:[#allocation22_spill]] %s4563_s16  ;;  %s3887_s24 = smov [#allocation8]  }
  0x1f   : > { %s4565_s1 = sld [smem:[#allocation27_spill]]  ;;  %p3476_p12 = pneg %p4027_p11 }
  0x20   : > { %s220_s10 = sshll.u32 %s3887_s24, 4  ;;  %s4568_s2 = sld [smem:[#allocation28_spill]]  ;;  %s221_s10 = int_to_ptr.vmem [resolvable:$true] %s220_s10 }
  0x21   : > { %p4035_p13 = pnand %p3476_p12, %p3999_p1  ;;  %s3888_s18 = smov 64  }
  0x22   : > { %s3890_s24 = smov [#allocation10]   ;;  %s4569_s3 = sld [smem:[#allocation29_spill]] }
  0x23   : > { %s234_s21 = sshll.u32 %s3890_s24, 4  ;;  %s3891_s16 = smov [#allocation11]   ;;  %s235_s21 = int_to_ptr.vmem [resolvable:$true] %s234_s21 }
  0x24   : > { %s39_s6 = sadd.s32 1, %s3877_s7  ;;  %s43_s15 = sadd.s32 1, %s3881_s8 }
  0x25   : > { %s218_s19 = sshll.u32 %s4565_s1, 4  ;;  %s3889_s1 = smov 4   ;;  %s219_s19 = int_to_ptr.hbm [resolvable:$true] %s218_s19 }
  0x26   : > { %s232_s17 = sshll.u32 %s4568_s2, 4  ;;  %s248_s2 = sshll.u32 %s3891_s16, 4  ;;  %s233_s17 = int_to_ptr.hbm [resolvable:$true] %s232_s17  ;;  %s249_s2 = int_to_ptr.vmem [resolvable:$true] %s248_s2 }
  0x27   : > { %3479 = dma.hbm_to_vmem [thread:$0]  (!%p4035_p13), %s219_s19, 4096, %s221_s10, [#allocation9], %s3888_s18, %s3888_s18, %s3889_s1  }
  0x28   : > { %s246_s13 = sshll.u32 %s4569_s3, 4  ;;  %s36_s19 = sadd.s32 1, %s3873_s30  ;;  %s247_s13 = int_to_ptr.hbm [resolvable:$true] %s246_s13 }
  0x29   : > { %3482 = dma.hbm_to_vmem [thread:$0]  (!%p4035_p13), %s233_s17, 1024, %s235_s21, [#allocation9], %s3888_s18, %s3888_s18, %s3889_s1  }
  0x2a   : > { %3485 = dma.hbm_to_vmem [thread:$0]  (!%p4035_p13), %s247_s13, 1024, %s249_s2, [#allocation12], %s3888_s18, %s3888_s18, %s3889_s1  }
  0x2b   : > { %p37_p0 = scmp.ge.s32.totalorder %s36_s19, 2  ;;  %s52_s10 = sadd.s32 1, %s3857_s26 }
  0x2c   : > { %p59_p2 = scmp.ne.s32.totalorder %s3857_s26, %s3853_s25  ;;  %p60_p5 = scmp.eq.s32.totalorder %s3885_s9, 0 }
  0x2d   : > { %s4600_s19 = smov (%p37_p0, %s36_s19), 0  ;;  %s4602_s6 = smov (!%p37_p0, %s39_s6), %s3877_s7 }
  0x2e   : > { %4570 = sst [smem:[#allocation23_spill]] %s4600_s19  ;;  %s48_s21 = ssub.s32 %s3873_s30, %s4600_s19 }
  0x2f   : > { %p41_p4 = scmp.ge.s32.totalorder %s4602_s6, 2  ;;  %p3497_p6 = scmp.lt.s32.totalorder %s3885_s9, 8 }
  0x30   : > { %s268_s1 = sand.u32 1, %s3857_s26   ;;  %p4070_p8 = por %p60_p5, %p59_p2 }
  0x31   : > { %s4604_s6 = smov (%p41_p4, %s4602_s6), 0  ;;  %s4606_s15 = smov (!%p41_p4, %s43_s15), %s3881_s8 }
  0x32   : > { %4571 = sst [smem:[#allocation24_spill]] %s4604_s6  ;;  %s47_s2 = ssub.s32 %s3877_s7, %s4604_s6 }
  0x33   : > { %p45_p10 = scmp.ge.s32.totalorder %s4606_s15, 2  ;;  %s49_s17 = sor.u32 %s48_s21, %s47_s2 }
  0x34   : > { %p50_p12 = scmp.eq.s32.totalorder %s49_s17, 0  ;;  %p181_p13 = scmp.eq.s32.totalorder %s47_s2, 0 }
  0x35   : > { %s4608_s15 = smov (%p45_p10, %s4606_s15), 0  ;;  %s4575_s24 = sadd.s32 1, %s3845_s23 }
  0x36   : > { %4573 = sst [smem:[#allocation25_spill]] %s4608_s15  ;;  %s2517_s16 = sshll.u32 %s268_s1, 8 }
  0x37   : > { %s4077_s18 = scalar_select %p50_p12, %s3857_s26, %s52_s10  }
  0x38   : > { %s4082_s13 = scalar_select %p181_p13, %s3845_s23, %s4575_s24  }
  0x39   : > { %4574 = sst [smem:[#allocation26_spill]] %s4077_s18  ;;  %s2519_s3 = sshll.u32 %s3873_s30, 1 }
  0x3a   : > { %s3060_s6 = sshll.u32 %s3877_s7, 7  ;;  %s272_s19 = scalar_lea.vmem [#allocation5], %s2517_s16 }
  0x3b   : > { %s283_s8 = sshll.u32 %s272_s19, 4  ;;  %s278_s5 = sadd.s32 %s3060_s6, %s2519_s3  ;;  %s284_s8 = int_to_ptr.vmem [resolvable:$true] %s283_s8 }
  0x3c   : > { %s2521_s4 = sshll.u32 %s278_s5, 2  ;;  %p3487_p0 = pnand %p3497_p6, %p4070_p8 }
  0x3d   : > { %s280_s17 = scalar_lea.hbm %s4534_s0, %s2521_s4  ;;  %s269_s15 = scalar_lea.sflag [#allocation6], %s268_s1 }
  0x3e   : > { %s281_s10 = sshll.u32 %s280_s17, 4  ;;  %s3892_s24 = smov 256   ;;  %s282_s10 = int_to_ptr.hbm [resolvable:$true] %s281_s10 }
  0x3f   : > { %s3893_s18 = smov 128   ;;  %s3894_s26 = smov 8  }
  0x40   : > { %3489 = dma.hbm_to_vmem [thread:$0]  (!%p3487_p0), %s282_s10, 4096, %s284_s8, %s269_s15, %s3892_s24, %s3893_s18, %s3894_s26  }
  0x41   : > { %295 = sbr.rel (%p4027_p11) target bundleno = 1248 (0x4e0), region = 44  ;;  %s297_s3 = sand.u32 (!%p4027_p11), 1, %s3853_s25  }
  0x42   : > { %s2523_s5 = sshll.u32 (!%p4027_p11), %s297_s3, 8  ;;  %s298_s19 = scalar_lea.sflag (!%p4027_p11), [#allocation6], %s297_s3 }
  0x43   : > { %s4096_s6 = scalar_lea.vmem (!%p4027_p11), [#allocation5], %s2523_s5 }
  0x46   : > { %3820 = dma.done.wait (%p4008_p3), %s298_s19, 4096  }
  0x47   : > { %3822 = vsyncadd (%p4008_p3), %s298_s19, 4294963200 }
  0x48   : > { %3824 = dma.done.wait (%p3999_p1), [#allocation9], 5120  }
  0x49   : > { %3826 = vsyncadd (%p3999_p1), [#allocation9], 4294962176 }
  0x4a   : > { %3828 = dma.done.wait (%p3999_p1), [#allocation12], 1024  }
  0x4b   : > { %3830 = vsyncadd (%p3999_p1), [#allocation12], 4294966272  ;;  %s343_s4 = sand.u32 1, %s3841_s22   ;;  %p2528_p3 = scmp.ne.s32.totalorder %s3861_s27, 0 }
  0x4c   : > { %s2527_s26 = sshll.u32 %s343_s4, 8 }
  0x4d   : > { %s4113_s8 = scalar_lea.vmem [#allocation13], %s2527_s26  ;;  %352 = sbr.rel (%p2528_p3) target bundleno = 115 (0x73), region = 64 }
  0x52   : > { %v3895_v0 = vmov 0.0  }
  0x53   : > { %353 = vst [vmem:[#allocation2 + $0xb0] sm:$0xff] %v3895_v0 }
  0x54   : > { %354 = vst [vmem:[#allocation2] sm:$0xff] %v3895_v0 }
  0x55   : > { %355 = vst [vmem:[#allocation2 + $0xd8] sm:$0xff] %v3895_v0 }
  0x56   : > { %356 = vst [vmem:[#allocation2 + $0x18] sm:$0xff] %v3895_v0 }
  0x57   : > { %357 = vst [vmem:[#allocation2 + $0x50] sm:$0xff] %v3895_v0 }
  0x58   : > { %358 = vst [vmem:[#allocation2 + $0x68] sm:$0xff] %v3895_v0 }
  0x59   : > { %359 = vst [vmem:[#allocation2 + $0x30] sm:$0xff] %v3895_v0 }
  0x5a   : > { %360 = vst [vmem:[#allocation2 + $0x48] sm:$0xff] %v3895_v0 }
  0x5b   : > { %361 = vst [vmem:[#allocation2 + $0x80] sm:$0xff] %v3895_v0 }
  0x5c   : > { %362 = vst [vmem:[#allocation2 + $0x88] sm:$0xff] %v3895_v0 }
  0x5d   : > { %363 = vst [vmem:[#allocation2 + $0xe8] sm:$0xff] %v3895_v0 }
  0x5e   : > { %364 = vst [vmem:[#allocation2 + $0xb8] sm:$0xff] %v3895_v0 }
  0x5f   : > { %365 = vst [vmem:[#allocation2 + $0x60] sm:$0xff] %v3895_v0 }
  0x60   : > { %366 = vst [vmem:[#allocation2 + $0xf0] sm:$0xff] %v3895_v0 }
  0x61   : > { %367 = vst [vmem:[#allocation2 + $0x8] sm:$0xff] %v3895_v0 }
  0x62   : > { %368 = vst [vmem:[#allocation2 + $0x78] sm:$0xff] %v3895_v0 }
  0x63   : > { %369 = vst [vmem:[#allocation2 + $0x38] sm:$0xff] %v3895_v0 }
  0x64   : > { %370 = vst [vmem:[#allocation2 + $0x58] sm:$0xff] %v3895_v0 }
  0x65   : > { %371 = vst [vmem:[#allocation2 + $0x40] sm:$0xff] %v3895_v0 }
  0x66   : > { %372 = vst [vmem:[#allocation2 + $0xc8] sm:$0xff] %v3895_v0 }
  0x67   : > { %373 = vst [vmem:[#allocation2 + $0xe0] sm:$0xff] %v3895_v0 }
  0x68   : > { %374 = vst [vmem:[#allocation2 + $0x90] sm:$0xff] %v3895_v0 }
  0x69   : > { %375 = vst [vmem:[#allocation2 + $0x70] sm:$0xff] %v3895_v0 }
  0x6a   : > { %376 = vst [vmem:[#allocation2 + $0xc0] sm:$0xff] %v3895_v0 }
  0x6b   : > { %377 = vst [vmem:[#allocation2 + $0xa8] sm:$0xff] %v3895_v0 }
  0x6c   : > { %378 = vst [vmem:[#allocation2 + $0xd0] sm:$0xff] %v3895_v0 }
  0x6d   : > { %379 = vst [vmem:[#allocation2 + $0x10] sm:$0xff] %v3895_v0 }
  0x6e   : > { %380 = vst [vmem:[#allocation2 + $0x28] sm:$0xff] %v3895_v0 }
  0x6f   : > { %381 = vst [vmem:[#allocation2 + $0xa0] sm:$0xff] %v3895_v0 }
  0x70   : > { %382 = vst [vmem:[#allocation2 + $0xf8] sm:$0xff] %v3895_v0 }
  0x71   : > { %383 = vst [vmem:[#allocation2 + $0x20] sm:$0xff] %v3895_v0 }
  0x72   : > { %384 = vst [vmem:[#allocation2 + $0x98] sm:$0xff] %v3895_v0 }
  0x73 PF: > { %p2529_p1 = scmp.ne.s32.totalorder %s3869_s29, 0 }
  0x74   : > { %s2530_s12 = sshll.u32 (!%p2529_p1), %s3861_s27, 8 }
  0x75   : > { %388 = sbr.rel (%p2529_p1) target bundleno = 412 (0x19c), region = 68  ;;  %s454_s14 = sshra.s32 (!%p2529_p1), %s2530_s12, 3 }
  0x76   : > { %s2531_s20 = sshll.u32 (!%p2529_p1), %s454_s14, 2 }
  0x77   : > { %s4120_s15 = scalar_lea.vmem (!%p2529_p1), [#allocation8], %s2531_s20 }
  0x7a   : > { %v3100_v1 = vld [vmem:[%s4120_s15 + $0x38] sm:$0xff]  ;;  %v3099_v3 = vld [vmem:[%s4120_s15 + $0x30] sm:$0xff]  ;;  %v3098_v5 = vld [vmem:[%s4120_s15 + $0x28] sm:$0xff] }
  0x7b   : > { %v3108_v2 = vld [vmem:[%s4120_s15 + $0x78] sm:$0xff]  ;;  %746 = vmatpush.bf16.msra.mxu0 %v3100_v1  ;;  %3380 = vmatpush.bf16.msra.mxu2 %v3100_v1  ;;  %v3107_v4 = vld [vmem:[%s4120_s15 + $0x70] sm:$0xff]  ;;  %v3106_v6 = vld [vmem:[%s4120_s15 + $0x68] sm:$0xff] }
  0x7c   : > { %835 = vmatpush.bf16.msra.mxu1 %v3108_v2  ;;  %3388 = vmatpush.bf16.msra.mxu3 %v3108_v2  ;;  %v3097_v7 = vld [vmem:[%s4120_s15 + $0x20] sm:$0xff]  ;;  %v3096_v9 = vld [vmem:[%s4120_s15 + $0x18] sm:$0xff]  ;;  %v3095_v11 = vld [vmem:[%s4120_s15 + $0x10] sm:$0xff] }
  0x7d   : > { %v3105_v8 = vld [vmem:[%s4120_s15 + $0x60] sm:$0xff]  ;;  %v3104_v10 = vld [vmem:[%s4120_s15 + $0x58] sm:$0xff]  ;;  %v3103_v12 = vld [vmem:[%s4120_s15 + $0x50] sm:$0xff] }
  0x7e   : > { %v3094_v13 = vld [vmem:[%s4120_s15 + $0x8] sm:$0xff]  ;;  %v2534_v15 = vld [vmem:[%s4096_s6] sm:$0xf]  ;;  %v3061_v21 = vld [vmem:[%s4096_s6 + $0x4] sm:$0xf] }
  0x7f   : > { %747 = vmatpush.bf16.msra.mxu0 %v3099_v3  ;;  %3381 = vmatpush.bf16.msra.mxu2 %v3099_v3  ;;  %v3102_v14 = vld [vmem:[%s4120_s15 + $0x48] sm:$0xff]  ;;  %v3093_v16 = vld [vmem:[%s4120_s15] sm:$0xff]  ;;  %v2542_v29 = vld [vmem:[%s4096_s6 + $0x10] sm:$0xf] }
  0x80   : > { %836 = vmatpush.bf16.msra.mxu1 %v3107_v4  ;;  %3389 = vmatpush.bf16.msra.mxu3 %v3107_v4  ;;  %v3101_v17 = vld [vmem:[%s4120_s15 + $0x40] sm:$0xff]  ;;  %v3062_v18 = vld [vmem:[%s4096_s6 + $0x4] sm:$0xf0]  ;;  %v2536_v22 = vld [vmem:[%s4096_s6 + $0x8] sm:$0xf0] }
  0x81   : > { %v2598_v19 = vld [vmem:[%s4096_s6 + $0x80] sm:$0xf]  ;;  %v3078_v20 = vld [vmem:[%s4096_s6 + $0x84] sm:$0xf0]  ;;  %v3077_v23 = vld [vmem:[%s4096_s6 + $0x84] sm:$0xf]  ;;  %v2535_v25 = vor.u32 %v3062_v18, %v2534_v15  ;;  %v2539_v27 = vor.u32 %v3061_v21, %v2536_v22 }
  0x82   : > { %v2600_v24 = vld [vmem:[%s4096_s6 + $0x88] sm:$0xf0]  ;;  %v2599_v26 = vor.u32 %v3078_v20, %v2598_v19  ;;  %v3064_v30 = vld [vmem:[%s4096_s6 + $0x14] sm:$0xf0]  ;;  %v2606_v31 = vld [vmem:[%s4096_s6 + $0x90] sm:$0xf] }
  0x83   : > { %748 = vmatpush.bf16.msra.mxu0 %v3098_v5  ;;  %3382 = vmatpush.bf16.msra.mxu2 %v3098_v5  ;;  %v2603_v28 = vor.u32 %v3077_v23, %v2600_v24  ;;  %v3080_v32 = vld [vmem:[%s4096_s6 + $0x94] sm:$0xf0]  ;;  %v3063_v33 = vld [vmem:[%s4096_s6 + $0x14] sm:$0xf]  ;;  %v2544_v34 = vld [vmem:[%s4096_s6 + $0x18] sm:$0xf0]  ;;  %v2543_v37 = vor.u32 %v3064_v30, %v2542_v29 }
  0x84   : > { %837 = vmatpush.bf16.msra.mxu1 %v3106_v6  ;;  %3390 = vmatpush.bf16.msra.mxu3 %v3106_v6  ;;  %v3079_v35 = vld [vmem:[%s4096_s6 + $0x94] sm:$0xf]  ;;  %v2608_v36 = vld [vmem:[%s4096_s6 + $0x98] sm:$0xf0]  ;;  %v2607_v38 = vor.u32 %v3080_v32, %v2606_v31  ;;  %v2547_v39 = vor.u32 %v3063_v33, %v2544_v34  ;;  %v2550_v41 = vld [vmem:[%s4096_s6 + $0x20] sm:$0xf] }
  0x85   : > { %v2611_v40 = vor.u32 %v3079_v35, %v2608_v36  ;;  %v3066_v42 = vld [vmem:[%s4096_s6 + $0x24] sm:$0xf0]  ;;  %v2614_v43 = vld [vmem:[%s4096_s6 + $0xa0] sm:$0xf]  ;;  %v3065_v45 = vld [vmem:[%s4096_s6 + $0x24] sm:$0xf] }
  0x86   : > { %v3082_v44 = vld [vmem:[%s4096_s6 + $0xa4] sm:$0xf0]  ;;  %v2552_v46 = vld [vmem:[%s4096_s6 + $0x28] sm:$0xf0]  ;;  %v3081_v47 = vld [vmem:[%s4096_s6 + $0xa4] sm:$0xf]  ;;  %v2551_v49 = vor.u32 %v3066_v42, %v2550_v41 }
  0x87   : > { %749 = vmatpush.bf16.msra.mxu0 %v3097_v7  ;;  %3383 = vmatpush.bf16.msra.mxu2 %v3097_v7  ;;  %v2616_v48 = vld [vmem:[%s4096_s6 + $0xa8] sm:$0xf0]  ;;  %v2615_v50 = vor.u32 %v3082_v44, %v2614_v43  ;;  %v2555_v51 = vor.u32 %v3065_v45, %v2552_v46  ;;  %v2558_v53 = vld [vmem:[%s4096_s6 + $0x30] sm:$0xf]  ;;  %v3068_v54 = vld [vmem:[%s4096_s6 + $0x34] sm:$0xf0] }
  0x88   : > { %838 = vmatpush.bf16.msra.mxu1 %v3105_v8  ;;  %3391 = vmatpush.bf16.msra.mxu3 %v3105_v8  ;;  %v2619_v52 = vor.u32 %v3081_v47, %v2616_v48  ;;  %v2622_v55 = vld [vmem:[%s4096_s6 + $0xb0] sm:$0xf]  ;;  %v3084_v56 = vld [vmem:[%s4096_s6 + $0xb4] sm:$0xf0]  ;;  %v3067_v57 = vld [vmem:[%s4096_s6 + $0x34] sm:$0xf]  ;;  %v2559_v61 = vor.u32 %v3068_v54, %v2558_v53 }
  0x89   : > { %v2560_v58 = vld [vmem:[%s4096_s6 + $0x38] sm:$0xf0]  ;;  %v3083_v59 = vld [vmem:[%s4096_s6 + $0xb4] sm:$0xf]  ;;  %v2623_v62 = vor.u32 %v3084_v56, %v2622_v55  ;;  %v2566_v1 = vld [vmem:[%s4096_s6 + $0x40] sm:$0xf] }
  0x8a   : > { %v2624_v60 = vld [vmem:[%s4096_s6 + $0xb8] sm:$0xf0]  ;;  %v2563_v63 = vor.u32 %v3067_v57, %v2560_v58  ;;  %v3070_v2 = vld [vmem:[%s4096_s6 + $0x44] sm:$0xf0]  ;;  %v2630_v3 = vld [vmem:[%s4096_s6 + $0xc0] sm:$0xf] }
  0x8b   : > { %750 = vmatpush.bf16.msra.mxu0 %v3096_v9  ;;  %3384 = vmatpush.bf16.msra.mxu2 %v3096_v9  ;;  %v2627_v0 = vor.u32 %v3083_v59, %v2624_v60  ;;  %v3086_v4 = vld [vmem:[%s4096_s6 + $0xc4] sm:$0xf0]  ;;  %v3069_v5 = vld [vmem:[%s4096_s6 + $0x44] sm:$0xf]  ;;  %v2568_v6 = vld [vmem:[%s4096_s6 + $0x48] sm:$0xf0]  ;;  %v2567_v9 = vor.u32 %v3070_v2, %v2566_v1 }
  0x8c   : > { %839 = vmatpush.bf16.msra.mxu1 %v3104_v10  ;;  %3392 = vmatpush.bf16.msra.mxu3 %v3104_v10  ;;  %v3085_v7 = vld [vmem:[%s4096_s6 + $0xc4] sm:$0xf]  ;;  %v2632_v8 = vld [vmem:[%s4096_s6 + $0xc8] sm:$0xf0]  ;;  %v2631_v10 = vor.u32 %v3086_v4, %v2630_v3  ;;  %v2638_v15 = vld [vmem:[%s4096_s6 + $0xd0] sm:$0xf] }
  0x8d   : > { %v2576_v18 = vld [vmem:[%s4096_s6 + $0x58] sm:$0xf0]  ;;  %v3087_v19 = vld [vmem:[%s4096_s6 + $0xd4] sm:$0xf]  ;;  %v3073_v29 = vld [vmem:[%s4096_s6 + $0x64] sm:$0xf] }
  0x8e   : > { %v2640_v20 = vld [vmem:[%s4096_s6 + $0xd8] sm:$0xf0]  ;;  %v2584_v30 = vld [vmem:[%s4096_s6 + $0x68] sm:$0xf0]  ;;  %v3089_v31 = vld [vmem:[%s4096_s6 + $0xe4] sm:$0xf] }
  0x8f   : > { %751 = vmatpush.bf16.msra.mxu0 %v3095_v11  ;;  %3385 = vmatpush.bf16.msra.mxu2 %v3095_v11  ;;  %v2571_v11 = vor.u32 %v3069_v5, %v2568_v6  ;;  %v2643_v24 = vor.u32 %v3087_v19, %v2640_v20  ;;  %v2648_v32 = vld [vmem:[%s4096_s6 + $0xe8] sm:$0xf0]  ;;  %v2587_v35 = vor.u32 %v3073_v29, %v2584_v30  ;;  %v3075_v41 = vld [vmem:[%s4096_s6 + $0x74] sm:$0xf]  ;;  %v2592_v42 = vld [vmem:[%s4096_s6 + $0x78] sm:$0xf0] }
  0x90   : > { %840 = vmatpush.bf16.msra.mxu1 %v3103_v12  ;;  %3393 = vmatpush.bf16.msra.mxu3 %v3103_v12  ;;  %v2635_v12 = vor.u32 %v3085_v7, %v2632_v8  ;;  %v2651_v36 = vor.u32 %v3089_v31, %v2648_v32  ;;  %v3091_v43 = vld [vmem:[%s4096_s6 + $0xf4] sm:$0xf]  ;;  %v2656_v44 = vld [vmem:[%s4096_s6 + $0xf8] sm:$0xf0]  ;;  %v2595_v47 = vor.u32 %v3075_v41, %v2592_v42  ;;  %v391_v59 = vld [vmem:[#allocation2] sm:$0xff] }
  0x91   : > { %v2659_v48 = vor.u32 %v3091_v43, %v2656_v44  ;;  %v406_v55 = vld [vmem:[#allocation2 + $0x38] sm:$0xff]  ;;  %v410_v31 = vld [vmem:[#allocation2 + $0xe0] sm:$0xff]  ;;  %v411_v41 = vld [vmem:[#allocation2 + $0x90] sm:$0xff] }
  0x92   : > { %v407_v1 = vld [vmem:[#allocation2 + $0x58] sm:$0xff] }
  0x93   : > { %752 = vmatpush.bf16.msra.mxu0 %v3094_v13  ;;  %3386 = vmatpush.bf16.msra.mxu2 %v3094_v13  ;;  %v2574_v13 = vld [vmem:[%s4096_s6 + $0x50] sm:$0xf]  ;;  %v392_v5 = vld [vmem:[#allocation2 + $0xd8] sm:$0xff] }
  0x94   : > { %841 = vmatpush.bf16.msra.mxu1 %v3102_v14  ;;  %3394 = vmatpush.bf16.msra.mxu3 %v3102_v14  ;;  %v3072_v14 = vld [vmem:[%s4096_s6 + $0x54] sm:$0xf0] }
  0x95   : > { %v2575_v21 = vor.u32 %v3072_v14, %v2574_v13 }
  0x97   : > { %753 = vmatpush.bf16.msra.mxu0 %v3093_v16  ;;  %3387 = vmatpush.bf16.msra.mxu2 %v3093_v16  ;;  %v3088_v16 = vld [vmem:[%s4096_s6 + $0xd4] sm:$0xf0] }
  0x98   : > { %842 = vmatpush.bf16.msra.mxu1 %v3101_v17  ;;  %3395 = vmatpush.bf16.msra.mxu3 %v3101_v17  ;;  %v3071_v17 = vld [vmem:[%s4096_s6 + $0x54] sm:$0xf]  ;;  %v2639_v22 = vor.u32 %v3088_v16, %v2638_v15  ;;  %v393_v15 = vld [vmem:[#allocation2 + $0x18] sm:$0xff] }
  0x99   : > { %v2579_v23 = vor.u32 %v3071_v17, %v2576_v18 }
  0x9a   : > { %754 = vmatmul.bf16.vlgmr.msra.gmra.mxu0 %v2535_v25  ;;  %794 = vmatmul.bf16.vlgmr.msra.gmra.mxu2 %v2599_v26  ;;  %v2582_v25 = vld [vmem:[%s4096_s6 + $0x60] sm:$0xf]  ;;  %v3074_v26 = vld [vmem:[%s4096_s6 + $0x64] sm:$0xf0] }
  0x9b   : > { %843 = vmatmul.bf16.vlgmr.msra.gmra.mxu1 %v2539_v27  ;;  %883 = vmatmul.bf16.vlgmr.msra.gmra.mxu3 %v2603_v28  ;;  %v2646_v27 = vld [vmem:[%s4096_s6 + $0xe0] sm:$0xf]  ;;  %v3090_v28 = vld [vmem:[%s4096_s6 + $0xe4] sm:$0xf0]  ;;  %v2583_v33 = vor.u32 %v3074_v26, %v2582_v25  ;;  %v394_v25 = vld [vmem:[#allocation2 + $0x50] sm:$0xff] }
  0x9c   : > { %v2647_v34 = vor.u32 %v3090_v28, %v2646_v27 }
  0xaa   : > { %759 = vmatmul.bf16.gmra.mxu0 %v2543_v37  ;;  %799 = vmatmul.bf16.gmra.mxu2 %v2607_v38  ;;  %v2590_v37 = vld [vmem:[%s4096_s6 + $0x70] sm:$0xf]  ;;  %v3076_v38 = vld [vmem:[%s4096_s6 + $0x74] sm:$0xf0] }
  0xab   : > { %848 = vmatmul.bf16.gmra.mxu1 %v2547_v39  ;;  %888 = vmatmul.bf16.gmra.mxu3 %v2611_v40  ;;  %v2654_v39 = vld [vmem:[%s4096_s6 + $0xf0] sm:$0xf]  ;;  %v3092_v40 = vld [vmem:[%s4096_s6 + $0xf4] sm:$0xf0]  ;;  %v2591_v45 = vor.u32 %v3076_v38, %v2590_v37 }
  0xac   : > { %v2655_v46 = vor.u32 %v3092_v40, %v2654_v39 }
  0xba   : > { %764 = vmatmul.bf16.gmra.mxu0 %v2551_v49  ;;  %804 = vmatmul.bf16.gmra.mxu2 %v2615_v50  ;;  %v390_v50 = vld [vmem:[#allocation2 + $0xb0] sm:$0xff] }
  0xbb   : > { %853 = vmatmul.bf16.gmra.mxu1 %v2555_v51  ;;  %893 = vmatmul.bf16.gmra.mxu3 %v2619_v52 }
  0xca   : > { %769 = vmatmul.bf16.gmra.mxu0 %v2559_v61  ;;  %809 = vmatmul.bf16.gmra.mxu2 %v2623_v62 }
  0xcb   : > { %858 = vmatmul.bf16.gmra.mxu1 %v2563_v63  ;;  %898 = vmatmul.bf16.gmra.mxu3 %v2627_v0 }
  0xda   : > { %774 = vmatmul.bf16.gmra.mxu0 %v2567_v9  ;;  %814 = vmatmul.bf16.gmra.mxu2 %v2631_v10 }
  0xdb   : > { %863 = vmatmul.bf16.gmra.mxu1 %v2571_v11  ;;  %903 = vmatmul.bf16.gmra.mxu3 %v2635_v12  ;;  %v408_v11 = vld [vmem:[#allocation2 + $0x40] sm:$0xff] }
  0xea   : > { %779 = vmatmul.bf16.gmra.mxu0 %v2575_v21  ;;  %819 = vmatmul.bf16.gmra.mxu2 %v2639_v22  ;;  %v409_v21 = vld [vmem:[#allocation2 + $0xc8] sm:$0xff] }
  0xeb   : > { %868 = vmatmul.bf16.gmra.mxu1 %v2579_v23  ;;  %908 = vmatmul.bf16.gmra.mxu3 %v2643_v24 }
  0xfa   : > { %784 = vmatmul.bf16.gmra.mxu0 %v2583_v33  ;;  %824 = vmatmul.bf16.gmra.mxu2 %v2647_v34 }
  0xfb   : > { %873 = vmatmul.bf16.gmra.mxu1 %v2587_v35  ;;  %913 = vmatmul.bf16.gmra.mxu3 %v2651_v36  ;;  %v395_v35 = vld [vmem:[#allocation2 + $0x68] sm:$0xff] }
 0x10a   : > { %789 = vmatmul.bf16.gmra.mxu0 %v2591_v45  ;;  %829 = vmatmul.bf16.gmra.mxu2 %v2655_v46  ;;  %v396_v45 = vld [vmem:[#allocation2 + $0x30] sm:$0xff] }
 0x10b   : > { %878 = vmatmul.bf16.gmra.mxu1 %v2595_v47  ;;  %918 = vmatmul.bf16.gmra.mxu3 %v2659_v48 }
 0x117   : > { %v755_v49 = vpop.f32.mrf.mxu0 }
 0x118   : > { %v844_v51 = vpop.f32.mrf.mxu1 }
 0x119   : > { %v845_v52 = vadd.f32 %v844_v51, %v755_v49  ;;  %v412_v51 = vld [vmem:[#allocation2 + $0x70] sm:$0xff] }
 0x11b   : > { %v924_v53 = vadd.f32 %v845_v52, %v390_v50 }
 0x11d   : > { %956 = vst [vmem:[#allocation2 + $0xb0] sm:$0xff] %v924_v53  ;;  %v795_v54 = vpop.f32.mrf.mxu2 }
 0x11e   : > { %v884_v56 = vpop.f32.mrf.mxu3 }
 0x11f   : > { %v885_v57 = vadd.f32 %v884_v56, %v795_v54  ;;  %v757_v58 = vpop.f32.mrf.mxu0 }
 0x120   : > { %v846_v60 = vpop.f32.mrf.mxu1 }
 0x121   : > { %v940_v61 = vadd.f32 %v885_v57, %v406_v55  ;;  %v847_v62 = vadd.f32 %v846_v60, %v757_v58  ;;  %v397_v55 = vld [vmem:[#allocation2 + $0x48] sm:$0xff] }
 0x123   : > { %972 = vst [vmem:[#allocation2 + $0x38] sm:$0xff] %v940_v61  ;;  %v925_v63 = vadd.f32 %v847_v62, %v391_v59  ;;  %v413_v61 = vld [vmem:[#allocation2 + $0xc0] sm:$0xff] }
 0x125   : > { %957 = vst [vmem:[#allocation2] sm:$0xff] %v925_v63  ;;  %v797_v0 = vpop.f32.mrf.mxu2 }
 0x126   : > { %v886_v2 = vpop.f32.mrf.mxu3 }
 0x127   : > { %v887_v3 = vadd.f32 %v886_v2, %v797_v0  ;;  %v760_v4 = vpop.f32.mrf.mxu0 }
 0x128   : > { %v849_v6 = vpop.f32.mrf.mxu1 }
 0x129   : > { %v941_v7 = vadd.f32 %v887_v3, %v407_v1  ;;  %v850_v8 = vadd.f32 %v849_v6, %v760_v4  ;;  %v398_v1 = vld [vmem:[#allocation2 + $0x80] sm:$0xff] }
 0x12b   : > { %973 = vst [vmem:[#allocation2 + $0x58] sm:$0xff] %v941_v7  ;;  %v926_v9 = vadd.f32 %v850_v8, %v392_v5  ;;  %v414_v7 = vld [vmem:[#allocation2 + $0xa8] sm:$0xff] }
 0x12d   : > { %958 = vst [vmem:[#allocation2 + $0xd8] sm:$0xff] %v926_v9  ;;  %v800_v10 = vpop.f32.mrf.mxu2 }
 0x12e   : > { %v889_v12 = vpop.f32.mrf.mxu3 }
 0x12f   : > { %v890_v13 = vadd.f32 %v889_v12, %v800_v10  ;;  %v762_v14 = vpop.f32.mrf.mxu0 }
 0x130   : > { %v851_v16 = vpop.f32.mrf.mxu1 }
 0x131   : > { %v942_v17 = vadd.f32 %v890_v13, %v408_v11  ;;  %v852_v18 = vadd.f32 %v851_v16, %v762_v14  ;;  %v399_v11 = vld [vmem:[#allocation2 + $0x88] sm:$0xff] }
 0x133   : > { %974 = vst [vmem:[#allocation2 + $0x40] sm:$0xff] %v942_v17  ;;  %v927_v19 = vadd.f32 %v852_v18, %v393_v15  ;;  %v415_v17 = vld [vmem:[#allocation2 + $0xd0] sm:$0xff] }
 0x135   : > { %959 = vst [vmem:[#allocation2 + $0x18] sm:$0xff] %v927_v19  ;;  %v802_v20 = vpop.f32.mrf.mxu2 }
 0x136   : > { %v891_v22 = vpop.f32.mrf.mxu3 }
 0x137   : > { %v892_v23 = vadd.f32 %v891_v22, %v802_v20  ;;  %v765_v24 = vpop.f32.mrf.mxu0 }
 0x138   : > { %v854_v26 = vpop.f32.mrf.mxu1 }
 0x139   : > { %v943_v27 = vadd.f32 %v892_v23, %v409_v21  ;;  %v855_v28 = vadd.f32 %v854_v26, %v765_v24  ;;  %v400_v21 = vld [vmem:[#allocation2 + $0xe8] sm:$0xff] }
 0x13b   : > { %975 = vst [vmem:[#allocation2 + $0xc8] sm:$0xff] %v943_v27  ;;  %v928_v29 = vadd.f32 %v855_v28, %v394_v25  ;;  %v416_v27 = vld [vmem:[#allocation2 + $0x10] sm:$0xff] }
 0x13d   : > { %960 = vst [vmem:[#allocation2 + $0x50] sm:$0xff] %v928_v29  ;;  %v805_v30 = vpop.f32.mrf.mxu2 }
 0x13e   : > { %v894_v32 = vpop.f32.mrf.mxu3 }
 0x13f   : > { %v895_v33 = vadd.f32 %v894_v32, %v805_v30  ;;  %v767_v34 = vpop.f32.mrf.mxu0 }
 0x140   : > { %v856_v36 = vpop.f32.mrf.mxu1 }
 0x141   : > { %v944_v37 = vadd.f32 %v895_v33, %v410_v31  ;;  %v857_v38 = vadd.f32 %v856_v36, %v767_v34  ;;  %v401_v31 = vld [vmem:[#allocation2 + $0xb8] sm:$0xff] }
 0x143   : > { %976 = vst [vmem:[#allocation2 + $0xe0] sm:$0xff] %v944_v37  ;;  %v929_v39 = vadd.f32 %v857_v38, %v395_v35  ;;  %v417_v37 = vld [vmem:[#allocation2 + $0x28] sm:$0xff] }
 0x145   : > { %961 = vst [vmem:[#allocation2 + $0x68] sm:$0xff] %v929_v39  ;;  %v807_v40 = vpop.f32.mrf.mxu2 }
 0x146   : > { %v896_v42 = vpop.f32.mrf.mxu3 }
 0x147   : > { %v897_v43 = vadd.f32 %v896_v42, %v807_v40  ;;  %v770_v44 = vpop.f32.mrf.mxu0 }
 0x148   : > { %v859_v46 = vpop.f32.mrf.mxu1 }
 0x149   : > { %v945_v47 = vadd.f32 %v897_v43, %v411_v41  ;;  %v860_v48 = vadd.f32 %v859_v46, %v770_v44  ;;  %v402_v41 = vld [vmem:[#allocation2 + $0x60] sm:$0xff] }
 0x14b   : > { %977 = vst [vmem:[#allocation2 + $0x90] sm:$0xff] %v945_v47  ;;  %v930_v49 = vadd.f32 %v860_v48, %v396_v45  ;;  %v418_v47 = vld [vmem:[#allocation2 + $0xa0] sm:$0xff] }
 0x14d   : > { %962 = vst [vmem:[#allocation2 + $0x30] sm:$0xff] %v930_v49  ;;  %v810_v50 = vpop.f32.mrf.mxu2 }
 0x14e   : > { %v899_v52 = vpop.f32.mrf.mxu3 }
 0x14f   : > { %v900_v53 = vadd.f32 %v899_v52, %v810_v50  ;;  %v772_v54 = vpop.f32.mrf.mxu0 }
 0x150   : > { %v861_v56 = vpop.f32.mrf.mxu1 }
 0x151   : > { %v946_v57 = vadd.f32 %v900_v53, %v412_v51  ;;  %v862_v58 = vadd.f32 %v861_v56, %v772_v54  ;;  %v403_v51 = vld [vmem:[#allocation2 + $0xf0] sm:$0xff] }
 0x153   : > { %978 = vst [vmem:[#allocation2 + $0x70] sm:$0xff] %v946_v57  ;;  %v931_v59 = vadd.f32 %v862_v58, %v397_v55  ;;  %v419_v57 = vld [vmem:[#allocation2 + $0xf8] sm:$0xff] }
 0x155   : > { %963 = vst [vmem:[#allocation2 + $0x48] sm:$0xff] %v931_v59  ;;  %v812_v60 = vpop.f32.mrf.mxu2 }
 0x156   : > { %v901_v62 = vpop.f32.mrf.mxu3 }
 0x157   : > { %v902_v63 = vadd.f32 %v901_v62, %v812_v60  ;;  %v775_v0 = vpop.f32.mrf.mxu0 }
 0x158   : > { %v864_v2 = vpop.f32.mrf.mxu1 }
 0x159   : > { %v947_v3 = vadd.f32 %v902_v63, %v413_v61  ;;  %v865_v4 = vadd.f32 %v864_v2, %v775_v0  ;;  %v404_v61 = vld [vmem:[#allocation2 + $0x8] sm:$0xff] }
 0x15b   : > { %979 = vst [vmem:[#allocation2 + $0xc0] sm:$0xff] %v947_v3  ;;  %v932_v5 = vadd.f32 %v865_v4, %v398_v1  ;;  %v420_v3 = vld [vmem:[#allocation2 + $0x20] sm:$0xff] }
 0x15d   : > { %964 = vst [vmem:[#allocation2 + $0x80] sm:$0xff] %v932_v5  ;;  %v815_v6 = vpop.f32.mrf.mxu2 }
 0x15e   : > { %v904_v8 = vpop.f32.mrf.mxu3 }
 0x15f   : > { %v905_v9 = vadd.f32 %v904_v8, %v815_v6  ;;  %v777_v10 = vpop.f32.mrf.mxu0 }
 0x160   : > { %v866_v12 = vpop.f32.mrf.mxu1 }
 0x161   : > { %v948_v13 = vadd.f32 %v905_v9, %v414_v7  ;;  %v867_v14 = vadd.f32 %v866_v12, %v777_v10  ;;  %v405_v7 = vld [vmem:[#allocation2 + $0x78] sm:$0xff] }
 0x163   : > { %980 = vst [vmem:[#allocation2 + $0xa8] sm:$0xff] %v948_v13  ;;  %v933_v15 = vadd.f32 %v867_v14, %v399_v11  ;;  %v421_v13 = vld [vmem:[#allocation2 + $0x98] sm:$0xff] }
 0x165   : > { %965 = vst [vmem:[#allocation2 + $0x88] sm:$0xff] %v933_v15  ;;  %v817_v16 = vpop.f32.mrf.mxu2 }
 0x166   : > { %v906_v18 = vpop.f32.mrf.mxu3 }
 0x167   : > { %v907_v19 = vadd.f32 %v906_v18, %v817_v16  ;;  %v780_v20 = vpop.f32.mrf.mxu0 }
 0x168   : > { %v869_v22 = vpop.f32.mrf.mxu1 }
 0x169   : > { %v949_v23 = vadd.f32 %v907_v19, %v415_v17  ;;  %v870_v24 = vadd.f32 %v869_v22, %v780_v20 }
 0x16b   : > { %981 = vst [vmem:[#allocation2 + $0xd0] sm:$0xff] %v949_v23  ;;  %v934_v25 = vadd.f32 %v870_v24, %v400_v21 }
 0x16d   : > { %966 = vst [vmem:[#allocation2 + $0xe8] sm:$0xff] %v934_v25  ;;  %v820_v26 = vpop.f32.mrf.mxu2 }
 0x16e   : > { %v909_v28 = vpop.f32.mrf.mxu3 }
 0x16f   : > { %v910_v29 = vadd.f32 %v909_v28, %v820_v26  ;;  %v782_v30 = vpop.f32.mrf.mxu0 }
 0x170   : > { %v871_v32 = vpop.f32.mrf.mxu1 }
 0x171   : > { %v950_v33 = vadd.f32 %v910_v29, %v416_v27  ;;  %v872_v34 = vadd.f32 %v871_v32, %v782_v30 }
 0x173   : > { %982 = vst [vmem:[#allocation2 + $0x10] sm:$0xff] %v950_v33  ;;  %v935_v35 = vadd.f32 %v872_v34, %v401_v31 }
 0x175   : > { %967 = vst [vmem:[#allocation2 + $0xb8] sm:$0xff] %v935_v35  ;;  %v822_v36 = vpop.f32.mrf.mxu2 }
 0x176   : > { %v911_v38 = vpop.f32.mrf.mxu3 }
 0x177   : > { %v912_v39 = vadd.f32 %v911_v38, %v822_v36  ;;  %v785_v40 = vpop.f32.mrf.mxu0 }
 0x178   : > { %v874_v42 = vpop.f32.mrf.mxu1 }
 0x179   : > { %v951_v43 = vadd.f32 %v912_v39, %v417_v37  ;;  %v875_v44 = vadd.f32 %v874_v42, %v785_v40 }
 0x17b   : > { %983 = vst [vmem:[#allocation2 + $0x28] sm:$0xff] %v951_v43  ;;  %v936_v45 = vadd.f32 %v875_v44, %v402_v41 }
 0x17d   : > { %968 = vst [vmem:[#allocation2 + $0x60] sm:$0xff] %v936_v45  ;;  %v825_v46 = vpop.f32.mrf.mxu2 }
 0x17e   : > { %v914_v48 = vpop.f32.mrf.mxu3 }
 0x17f   : > { %v915_v49 = vadd.f32 %v914_v48, %v825_v46  ;;  %v787_v50 = vpop.f32.mrf.mxu0 }
 0x180   : > { %v876_v52 = vpop.f32.mrf.mxu1 }
 0x181   : > { %v952_v53 = vadd.f32 %v915_v49, %v418_v47  ;;  %v877_v54 = vadd.f32 %v876_v52, %v787_v50 }
 0x183   : > { %984 = vst [vmem:[#allocation2 + $0xa0] sm:$0xff] %v952_v53  ;;  %v937_v55 = vadd.f32 %v877_v54, %v403_v51 }
 0x185   : > { %969 = vst [vmem:[#allocation2 + $0xf0] sm:$0xff] %v937_v55  ;;  %v827_v56 = vpop.f32.mrf.mxu2 }
 0x186   : > { %v916_v58 = vpop.f32.mrf.mxu3 }
 0x187   : > { %v917_v59 = vadd.f32 %v916_v58, %v827_v56  ;;  %v790_v60 = vpop.f32.mrf.mxu0 }
 0x188   : > { %v879_v62 = vpop.f32.mrf.mxu1 }
 0x189   : > { %v953_v63 = vadd.f32 %v917_v59, %v419_v57  ;;  %v880_v0 = vadd.f32 %v879_v62, %v790_v60 }
 0x18b   : > { %985 = vst [vmem:[#allocation2 + $0xf8] sm:$0xff] %v953_v63  ;;  %v938_v1 = vadd.f32 %v880_v0, %v404_v61 }
 0x18d   : > { %970 = vst [vmem:[#allocation2 + $0x8] sm:$0xff] %v938_v1  ;;  %v830_v2 = vpop.f32.mrf.mxu2 }
 0x18e   : > { %v919_v4 = vpop.f32.mrf.mxu3 }
 0x18f   : > { %v920_v5 = vadd.f32 %v919_v4, %v830_v2  ;;  %v792_v6 = vpop.f32.mrf.mxu0 }
 0x190   : > { %v881_v8 = vpop.f32.mrf.mxu1 }
 0x191   : > { %v954_v9 = vadd.f32 %v920_v5, %v420_v3  ;;  %v882_v10 = vadd.f32 %v881_v8, %v792_v6 }
 0x193   : > { %986 = vst [vmem:[#allocation2 + $0x20] sm:$0xff] %v954_v9  ;;  %v939_v11 = vadd.f32 %v882_v10, %v405_v7 }
 0x195   : > { %971 = vst [vmem:[#allocation2 + $0x78] sm:$0xff] %v939_v11  ;;  %v832_v12 = vpop.f32.mrf.mxu2 }
 0x196   : > { %v921_v14 = vpop.f32.mrf.mxu3 }
 0x197   : > { %v922_v15 = vadd.f32 %v921_v14, %v832_v12 }
 0x199   : > { %v955_v16 = vadd.f32 %v922_v15, %v421_v13 }
 0x19b   : > { %987 = vst [vmem:[#allocation2 + $0x98] sm:$0xff] %v955_v16 }
 0x19c PF: > { %p2724_p11 = scmp.ne.s32.totalorder %s3869_s29, 1 }
 0x19d   : > { %s2725_s1 = sshll.u32 (!%p2724_p11), %s3861_s27, 8  ;;  %p2726_p2 = scmp.ne.s32.totalorder (!%p2724_p11), %s3865_s28, 0 }
 0x19e   : > { %991 = sbr.rel (%p2724_p11) target bundleno = 945 (0x3b1), region = 72 }
 0x1a3   : > { %996 = sbr.rel (%p2726_p2) target bundleno = 649 (0x289), region = 76  ;;  %s4209_s11 = sshra.s32 (!%p2726_p2), %s2725_s1, 3 }
 0x1a4   : > { %s2727_s18 = sshll.u32 (!%p2726_p2), %s4209_s11, 2 }
 0x1a5   : > { %s4214_s16 = scalar_lea.vmem (!%p2726_p2), [#allocation3], %s2727_s18  ;;  %s4234_s21 = scalar_lea.vmem (!%p2726_p2), [#allocation4], %s2727_s18 }
 0x1a8   : > { %v3132_v17 = vld [vmem:[#allocation11 + $0x38] sm:$0xff]  ;;  %v3131_v18 = vld [vmem:[#allocation11 + $0x30] sm:$0xff]  ;;  %v3130_v19 = vld [vmem:[#allocation11 + $0x28] sm:$0xff] }
 0x1a9   : > { %1193 = vmatpush.bf16.msra.mxu0 %v3132_v17  ;;  %3396 = vmatpush.bf16.msra.mxu1 %v3132_v17  ;;  %v3129_v20 = vld [vmem:[#allocation11 + $0x20] sm:$0xff]  ;;  %v3128_v21 = vld [vmem:[#allocation11 + $0x18] sm:$0xff]  ;;  %v3127_v22 = vld [vmem:[#allocation11 + $0x10] sm:$0xff] }
 0x1aa   : > { %3397 = vmatpush.bf16.msra.mxu2 %v3132_v17  ;;  %3398 = vmatpush.bf16.msra.mxu3 %v3132_v17  ;;  %v3126_v23 = vld [vmem:[#allocation11 + $0x8] sm:$0xff]  ;;  %v3125_v24 = vld [vmem:[#allocation11] sm:$0xff]  ;;  %v3111_v33 = vld [vmem:[%s4214_s16 + $0x10] sm:$0xff] }
 0x1ab   : > { %v3109_v25 = vld [vmem:[%s4214_s16] sm:$0xff]  ;;  %v3110_v29 = vld [vmem:[%s4214_s16 + $0x8] sm:$0xff]  ;;  %v3115_v34 = vld [vmem:[%s4214_s16 + $0x30] sm:$0xff] }
 0x1ac   : > { %v3113_v26 = vld [vmem:[%s4214_s16 + $0x20] sm:$0xff]  ;;  %v3114_v30 = vld [vmem:[%s4214_s16 + $0x28] sm:$0xff]  ;;  %v3119_v35 = vld [vmem:[%s4214_s16 + $0x50] sm:$0xff] }
 0x1ad   : > { %1194 = vmatpush.bf16.msra.mxu0 %v3131_v18  ;;  %3399 = vmatpush.bf16.msra.mxu1 %v3131_v18  ;;  %v3117_v27 = vld [vmem:[%s4214_s16 + $0x40] sm:$0xff]  ;;  %v3118_v31 = vld [vmem:[%s4214_s16 + $0x48] sm:$0xff]  ;;  %v3123_v36 = vld [vmem:[%s4214_s16 + $0x70] sm:$0xff] }
 0x1ae   : > { %3400 = vmatpush.bf16.msra.mxu2 %v3131_v18  ;;  %3401 = vmatpush.bf16.msra.mxu3 %v3131_v18  ;;  %v3121_v28 = vld [vmem:[%s4214_s16 + $0x60] sm:$0xff]  ;;  %v3122_v32 = vld [vmem:[%s4214_s16 + $0x68] sm:$0xff]  ;;  %v3112_v37 = vld [vmem:[%s4214_s16 + $0x18] sm:$0xff] }
 0x1af   : > { %v3116_v38 = vld [vmem:[%s4214_s16 + $0x38] sm:$0xff] }
 0x1b0   : > { %v3120_v39 = vld [vmem:[%s4214_s16 + $0x58] sm:$0xff] }
 0x1b1   : > { %1195 = vmatpush.bf16.msra.mxu0 %v3130_v19  ;;  %3402 = vmatpush.bf16.msra.mxu1 %v3130_v19  ;;  %v3124_v40 = vld [vmem:[%s4214_s16 + $0x78] sm:$0xff] }
 0x1b2   : > { %3403 = vmatpush.bf16.msra.mxu2 %v3130_v19  ;;  %3404 = vmatpush.bf16.msra.mxu3 %v3130_v19 }
 0x1b5   : > { %1196 = vmatpush.bf16.msra.mxu0 %v3129_v20  ;;  %3405 = vmatpush.bf16.msra.mxu1 %v3129_v20 }
 0x1b6   : > { %3406 = vmatpush.bf16.msra.mxu2 %v3129_v20  ;;  %3407 = vmatpush.bf16.msra.mxu3 %v3129_v20 }
 0x1b9   : > { %1197 = vmatpush.bf16.msra.mxu0 %v3128_v21  ;;  %3408 = vmatpush.bf16.msra.mxu1 %v3128_v21 }
 0x1ba   : > { %3409 = vmatpush.bf16.msra.mxu2 %v3128_v21  ;;  %3410 = vmatpush.bf16.msra.mxu3 %v3128_v21 }
 0x1bd   : > { %1198 = vmatpush.bf16.msra.mxu0 %v3127_v22  ;;  %3411 = vmatpush.bf16.msra.mxu1 %v3127_v22 }
 0x1be   : > { %3412 = vmatpush.bf16.msra.mxu2 %v3127_v22  ;;  %3413 = vmatpush.bf16.msra.mxu3 %v3127_v22 }
 0x1c1   : > { %1199 = vmatpush.bf16.msra.mxu0 %v3126_v23  ;;  %3414 = vmatpush.bf16.msra.mxu1 %v3126_v23 }
 0x1c2   : > { %3415 = vmatpush.bf16.msra.mxu2 %v3126_v23  ;;  %3416 = vmatpush.bf16.msra.mxu3 %v3126_v23 }
 0x1c5   : > { %1200 = vmatpush.bf16.msra.mxu0 %v3125_v24  ;;  %3417 = vmatpush.bf16.msra.mxu1 %v3125_v24 }
 0x1c6   : > { %3418 = vmatpush.bf16.msra.mxu2 %v3125_v24  ;;  %3419 = vmatpush.bf16.msra.mxu3 %v3125_v24 }
 0x1c8   : > { %1201 = vmatmul.bf16.vlgmr.msra.gmra.mxu0 %v3109_v25  ;;  %1221 = vmatmul.bf16.vlgmr.msra.gmra.mxu1 %v3113_v26 }
 0x1c9   : > { %1241 = vmatmul.bf16.vlgmr.msra.gmra.mxu2 %v3117_v27  ;;  %1261 = vmatmul.bf16.vlgmr.msra.gmra.mxu3 %v3121_v28 }
 0x1d8   : > { %1206 = vmatmul.bf16.gmra.mxu0 %v3110_v29  ;;  %1226 = vmatmul.bf16.gmra.mxu1 %v3114_v30 }
 0x1d9   : > { %1246 = vmatmul.bf16.gmra.mxu2 %v3118_v31  ;;  %1266 = vmatmul.bf16.gmra.mxu3 %v3122_v32 }
 0x1e8   : > { %1211 = vmatmul.bf16.gmra.mxu0 %v3111_v33  ;;  %1231 = vmatmul.bf16.gmra.mxu1 %v3115_v34 }
 0x1e9   : > { %1251 = vmatmul.bf16.gmra.mxu2 %v3119_v35  ;;  %1271 = vmatmul.bf16.gmra.mxu3 %v3123_v36 }
 0x1f8   : > { %1216 = vmatmul.bf16.gmra.mxu0 %v3112_v37  ;;  %1236 = vmatmul.bf16.gmra.mxu1 %v3116_v38 }
 0x1f9   : > { %1256 = vmatmul.bf16.gmra.mxu2 %v3120_v39  ;;  %1276 = vmatmul.bf16.gmra.mxu3 %v3124_v40 }
 0x245   : > { %v1202_v41 = vpop.f32.mrf.mxu0  ;;  %v1222_v42 = vpop.f32.mrf.mxu1 }
 0x24c   : > { %v1242_v43 = vpop.f32.mrf.mxu2  ;;  %v1262_v44 = vpop.f32.mrf.mxu3 }
 0x24d   : > { %v1204_v45 = vpop.f32.mrf.mxu0  ;;  %v1224_v46 = vpop.f32.mrf.mxu1 }
 0x24e   : > { %v3193_v47 = vpack.c.bf16 %v1204_v45, %v1202_v41  ;;  %v3213_v48 = vpack.c.bf16 %v1224_v46, %v1222_v42 }
 0x250   : > { %3194 = vst [vmem:[%s4234_s21] sm:$0xff] %v3193_v47  }
 0x251   : > { %3353 = vst [vmem:[%s4234_s21 + $0x20] sm:$0xff] %v3213_v48  }
 0x254   : > { %v1244_v49 = vpop.f32.mrf.mxu2  ;;  %v1264_v50 = vpop.f32.mrf.mxu3 }
 0x255   : > { %v3233_v51 = vpack.c.bf16 %v1244_v49, %v1242_v43  ;;  %v3253_v52 = vpack.c.bf16 %v1264_v50, %v1262_v44  ;;  %v1207_v53 = vpop.f32.mrf.mxu0  ;;  %v1227_v54 = vpop.f32.mrf.mxu1 }
 0x257   : > { %3357 = vst [vmem:[%s4234_s21 + $0x40] sm:$0xff] %v3233_v51  }
 0x258   : > { %3361 = vst [vmem:[%s4234_s21 + $0x60] sm:$0xff] %v3253_v52  }
 0x25c   : > { %v1247_v55 = vpop.f32.mrf.mxu2  ;;  %v1267_v56 = vpop.f32.mrf.mxu3 }
 0x25d   : > { %v1209_v57 = vpop.f32.mrf.mxu0  ;;  %v1229_v58 = vpop.f32.mrf.mxu1 }
 0x25e   : > { %v3198_v59 = vpack.c.bf16 %v1209_v57, %v1207_v53  ;;  %v3218_v60 = vpack.c.bf16 %v1229_v58, %v1227_v54 }
 0x260   : > { %3350 = vst [vmem:[%s4234_s21 + $0x8] sm:$0xff] %v3198_v59  }
 0x261   : > { %3354 = vst [vmem:[%s4234_s21 + $0x28] sm:$0xff] %v3218_v60  }
 0x264   : > { %v1249_v61 = vpop.f32.mrf.mxu2  ;;  %v1269_v62 = vpop.f32.mrf.mxu3 }
 0x265   : > { %v3238_v63 = vpack.c.bf16 %v1249_v61, %v1247_v55  ;;  %v3258_v0 = vpack.c.bf16 %v1269_v62, %v1267_v56  ;;  %v1212_v1 = vpop.f32.mrf.mxu0  ;;  %v1232_v2 = vpop.f32.mrf.mxu1 }
 0x267   : > { %3358 = vst [vmem:[%s4234_s21 + $0x48] sm:$0xff] %v3238_v63  }
 0x268   : > { %3362 = vst [vmem:[%s4234_s21 + $0x68] sm:$0xff] %v3258_v0  }
 0x26c   : > { %v1252_v3 = vpop.f32.mrf.mxu2  ;;  %v1272_v4 = vpop.f32.mrf.mxu3 }
 0x26d   : > { %v1214_v5 = vpop.f32.mrf.mxu0  ;;  %v1234_v6 = vpop.f32.mrf.mxu1 }
 0x26e   : > { %v3203_v7 = vpack.c.bf16 %v1214_v5, %v1212_v1  ;;  %v3223_v8 = vpack.c.bf16 %v1234_v6, %v1232_v2 }
 0x270   : > { %3351 = vst [vmem:[%s4234_s21 + $0x10] sm:$0xff] %v3203_v7  }
 0x271   : > { %3355 = vst [vmem:[%s4234_s21 + $0x30] sm:$0xff] %v3223_v8  }
 0x274   : > { %v1254_v9 = vpop.f32.mrf.mxu2  ;;  %v1274_v10 = vpop.f32.mrf.mxu3 }
 0x275   : > { %v3243_v11 = vpack.c.bf16 %v1254_v9, %v1252_v3  ;;  %v3263_v12 = vpack.c.bf16 %v1274_v10, %v1272_v4  ;;  %v1217_v13 = vpop.f32.mrf.mxu0  ;;  %v1237_v14 = vpop.f32.mrf.mxu1 }
 0x277   : > { %3359 = vst [vmem:[%s4234_s21 + $0x50] sm:$0xff] %v3243_v11  }
 0x278   : > { %3363 = vst [vmem:[%s4234_s21 + $0x70] sm:$0xff] %v3263_v12  }
 0x27c   : > { %v1257_v15 = vpop.f32.mrf.mxu2  ;;  %v1277_v16 = vpop.f32.mrf.mxu3 }
 0x27d   : > { %v1219_v17 = vpop.f32.mrf.mxu0  ;;  %v1239_v18 = vpop.f32.mrf.mxu1 }
 0x27e   : > { %v3208_v19 = vpack.c.bf16 %v1219_v17, %v1217_v13  ;;  %v3228_v20 = vpack.c.bf16 %v1239_v18, %v1237_v14 }
 0x280   : > { %3352 = vst [vmem:[%s4234_s21 + $0x18] sm:$0xff] %v3208_v19  }
 0x281   : > { %3356 = vst [vmem:[%s4234_s21 + $0x38] sm:$0xff] %v3228_v20  }
 0x284   : > { %v1259_v21 = vpop.f32.mrf.mxu2  ;;  %v1279_v22 = vpop.f32.mrf.mxu3 }
 0x285   : > { %v3248_v23 = vpack.c.bf16 %v1259_v21, %v1257_v15  ;;  %v3268_v24 = vpack.c.bf16 %v1279_v22, %v1277_v16 }
 0x287   : > { %3360 = vst [vmem:[%s4234_s21 + $0x58] sm:$0xff] %v3248_v23  }
 0x288   : > { %3364 = vst [vmem:[%s4234_s21 + $0x78] sm:$0xff] %v3268_v24  }
 0x289 PF: > { %s1412_s2 = sshra.s32 %s2725_s1, 3  ;;  %v2828_v39 = vld [vmem:[%s4096_s6] sm:$0xf]  ;;  %v3134_v42 = vld [vmem:[%s4096_s6 + $0x4] sm:$0xf0] }
 0x28a   : > { %s2825_s17 = sshll.u32 %s1412_s2, 2  ;;  %v2892_v43 = vld [vmem:[%s4096_s6 + $0x80] sm:$0xf]  ;;  %v3150_v44 = vld [vmem:[%s4096_s6 + $0x84] sm:$0xf0]  ;;  %v2829_v49 = vor.u32 %v3134_v42, %v2828_v39 }
 0x28b   : > { %s4254_s10 = scalar_lea.vmem [#allocation4], %s2825_s17  ;;  %v3133_v45 = vld [vmem:[%s4096_s6 + $0x4] sm:$0xf]  ;;  %v2830_v46 = vld [vmem:[%s4096_s6 + $0x8] sm:$0xf0]  ;;  %v2893_v50 = vor.u32 %v3150_v44, %v2892_v43 }
 0x28c   : > { %v3149_v47 = vld [vmem:[%s4096_s6 + $0x84] sm:$0xf]  ;;  %v2894_v48 = vld [vmem:[%s4096_s6 + $0x88] sm:$0xf0]  ;;  %v2833_v51 = vor.u32 %v3133_v45, %v2830_v46  ;;  %v2836_v53 = vld [vmem:[%s4096_s6 + $0x10] sm:$0xf] }
 0x28d   : > { %v2897_v52 = vor.u32 %v3149_v47, %v2894_v48  ;;  %v3136_v54 = vld [vmem:[%s4096_s6 + $0x14] sm:$0xf0]  ;;  %v2900_v55 = vld [vmem:[%s4096_s6 + $0x90] sm:$0xf]  ;;  %v3135_v57 = vld [vmem:[%s4096_s6 + $0x14] sm:$0xf] }
 0x28e   : > { %v3152_v56 = vld [vmem:[%s4096_s6 + $0x94] sm:$0xf0]  ;;  %v2838_v58 = vld [vmem:[%s4096_s6 + $0x18] sm:$0xf0]  ;;  %v3151_v59 = vld [vmem:[%s4096_s6 + $0x94] sm:$0xf]  ;;  %v2837_v61 = vor.u32 %v3136_v54, %v2836_v53 }
 0x28f   : > { %v3172_v25 = vld [vmem:[%s4254_s10 + $0x38] sm:$0xff]  ;;  %v3171_v27 = vld [vmem:[%s4254_s10 + $0x30] sm:$0xff]  ;;  %v3170_v29 = vld [vmem:[%s4254_s10 + $0x28] sm:$0xff]  ;;  %v2901_v62 = vor.u32 %v3152_v56, %v2900_v55  ;;  %v2841_v63 = vor.u32 %v3135_v57, %v2838_v58 }
 0x290   : > { %v3180_v26 = vld [vmem:[%s4254_s10 + $0x78] sm:$0xff]  ;;  %1704 = vmatpush.bf16.msra.mxu0 %v3172_v25  ;;  %3420 = vmatpush.bf16.msra.mxu2 %v3172_v25  ;;  %v3179_v28 = vld [vmem:[%s4254_s10 + $0x70] sm:$0xff]  ;;  %v3178_v30 = vld [vmem:[%s4254_s10 + $0x68] sm:$0xff] }
 0x291   : > { %1793 = vmatpush.bf16.msra.mxu1 %v3180_v26  ;;  %3428 = vmatpush.bf16.msra.mxu3 %v3180_v26  ;;  %v3169_v31 = vld [vmem:[%s4254_s10 + $0x20] sm:$0xff]  ;;  %v3168_v33 = vld [vmem:[%s4254_s10 + $0x18] sm:$0xff]  ;;  %v3167_v35 = vld [vmem:[%s4254_s10 + $0x10] sm:$0xff] }
 0x292   : > { %v3177_v32 = vld [vmem:[%s4254_s10 + $0x60] sm:$0xff]  ;;  %v3176_v34 = vld [vmem:[%s4254_s10 + $0x58] sm:$0xff]  ;;  %v3175_v36 = vld [vmem:[%s4254_s10 + $0x50] sm:$0xff] }
 0x293   : > { %v3166_v37 = vld [vmem:[%s4254_s10 + $0x8] sm:$0xff]  ;;  %v3165_v40 = vld [vmem:[%s4254_s10] sm:$0xff]  ;;  %v2902_v60 = vld [vmem:[%s4096_s6 + $0x98] sm:$0xf0] }
 0x294   : > { %1705 = vmatpush.bf16.msra.mxu0 %v3171_v27  ;;  %3421 = vmatpush.bf16.msra.mxu2 %v3171_v27  ;;  %v3174_v38 = vld [vmem:[%s4254_s10 + $0x48] sm:$0xff]  ;;  %v3173_v41 = vld [vmem:[%s4254_s10 + $0x40] sm:$0xff]  ;;  %v2905_v0 = vor.u32 %v3151_v59, %v2902_v60  ;;  %v2852_v13 = vld [vmem:[%s4096_s6 + $0x30] sm:$0xf] }
 0x295   : > { %1794 = vmatpush.bf16.msra.mxu1 %v3179_v28  ;;  %3429 = vmatpush.bf16.msra.mxu3 %v3179_v28  ;;  %v2844_v1 = vld [vmem:[%s4096_s6 + $0x20] sm:$0xf]  ;;  %v3138_v2 = vld [vmem:[%s4096_s6 + $0x24] sm:$0xf0]  ;;  %v3137_v5 = vld [vmem:[%s4096_s6 + $0x24] sm:$0xf] }
 0x296   : > { %v2908_v3 = vld [vmem:[%s4096_s6 + $0xa0] sm:$0xf]  ;;  %v3154_v4 = vld [vmem:[%s4096_s6 + $0xa4] sm:$0xf0]  ;;  %v2846_v6 = vld [vmem:[%s4096_s6 + $0x28] sm:$0xf0]  ;;  %v2845_v9 = vor.u32 %v3138_v2, %v2844_v1 }
 0x297   : > { %v3153_v7 = vld [vmem:[%s4096_s6 + $0xa4] sm:$0xf]  ;;  %v2910_v8 = vld [vmem:[%s4096_s6 + $0xa8] sm:$0xf0]  ;;  %v2909_v10 = vor.u32 %v3154_v4, %v2908_v3  ;;  %v2849_v11 = vor.u32 %v3137_v5, %v2846_v6  ;;  %v3140_v14 = vld [vmem:[%s4096_s6 + $0x34] sm:$0xf0] }
 0x298   : > { %1706 = vmatpush.bf16.msra.mxu0 %v3170_v29  ;;  %3422 = vmatpush.bf16.msra.mxu2 %v3170_v29  ;;  %v2913_v12 = vor.u32 %v3153_v7, %v2910_v8  ;;  %v2916_v15 = vld [vmem:[%s4096_s6 + $0xb0] sm:$0xf]  ;;  %v3156_v16 = vld [vmem:[%s4096_s6 + $0xb4] sm:$0xf0]  ;;  %v3139_v17 = vld [vmem:[%s4096_s6 + $0x34] sm:$0xf]  ;;  %v2853_v21 = vor.u32 %v3140_v14, %v2852_v13 }
 0x299   : > { %1795 = vmatpush.bf16.msra.mxu1 %v3178_v30  ;;  %3430 = vmatpush.bf16.msra.mxu3 %v3178_v30  ;;  %v2854_v18 = vld [vmem:[%s4096_s6 + $0x38] sm:$0xf0]  ;;  %v3155_v19 = vld [vmem:[%s4096_s6 + $0xb4] sm:$0xf]  ;;  %v2917_v22 = vor.u32 %v3156_v16, %v2916_v15  ;;  %v2860_v25 = vld [vmem:[%s4096_s6 + $0x40] sm:$0xf] }
 0x29a   : > { %v2918_v20 = vld [vmem:[%s4096_s6 + $0xb8] sm:$0xf0]  ;;  %v2857_v23 = vor.u32 %v3139_v17, %v2854_v18  ;;  %v3142_v26 = vld [vmem:[%s4096_s6 + $0x44] sm:$0xf0]  ;;  %v2924_v27 = vld [vmem:[%s4096_s6 + $0xc0] sm:$0xf] }
 0x29b   : > { %v2921_v24 = vor.u32 %v3155_v19, %v2918_v20  ;;  %v3158_v28 = vld [vmem:[%s4096_s6 + $0xc4] sm:$0xf0]  ;;  %v3141_v29 = vld [vmem:[%s4096_s6 + $0x44] sm:$0xf]  ;;  %v2862_v30 = vld [vmem:[%s4096_s6 + $0x48] sm:$0xf0] }
 0x29c   : > { %1707 = vmatpush.bf16.msra.mxu0 %v3169_v31  ;;  %3423 = vmatpush.bf16.msra.mxu2 %v3169_v31  ;;  %v3157_v31 = vld [vmem:[%s4096_s6 + $0xc4] sm:$0xf]  ;;  %v2932_v39 = vld [vmem:[%s4096_s6 + $0xd0] sm:$0xf]  ;;  %v2870_v42 = vld [vmem:[%s4096_s6 + $0x58] sm:$0xf0] }
 0x29d   : > { %1796 = vmatpush.bf16.msra.mxu1 %v3177_v32  ;;  %3431 = vmatpush.bf16.msra.mxu3 %v3177_v32  ;;  %v2926_v32 = vld [vmem:[%s4096_s6 + $0xc8] sm:$0xf0]  ;;  %v3159_v43 = vld [vmem:[%s4096_s6 + $0xd4] sm:$0xf]  ;;  %v2934_v44 = vld [vmem:[%s4096_s6 + $0xd8] sm:$0xf0] }
 0x29e   : > { %v2937_v48 = vor.u32 %v3159_v43, %v2934_v44  ;;  %v3145_v53 = vld [vmem:[%s4096_s6 + $0x64] sm:$0xf]  ;;  %v2878_v54 = vld [vmem:[%s4096_s6 + $0x68] sm:$0xf0]  ;;  %v3147_v1 = vld [vmem:[%s4096_s6 + $0x74] sm:$0xf] }
 0x29f   : > { %v3161_v55 = vld [vmem:[%s4096_s6 + $0xe4] sm:$0xf]  ;;  %v2942_v56 = vld [vmem:[%s4096_s6 + $0xe8] sm:$0xf0]  ;;  %v2881_v59 = vor.u32 %v3145_v53, %v2878_v54  ;;  %v2886_v2 = vld [vmem:[%s4096_s6 + $0x78] sm:$0xf0] }
 0x2a0   : > { %1708 = vmatpush.bf16.msra.mxu0 %v3168_v33  ;;  %3424 = vmatpush.bf16.msra.mxu2 %v3168_v33  ;;  %v2861_v33 = vor.u32 %v3142_v26, %v2860_v25  ;;  %v2945_v60 = vor.u32 %v3161_v55, %v2942_v56  ;;  %v3163_v3 = vld [vmem:[%s4096_s6 + $0xf4] sm:$0xf]  ;;  %v2950_v4 = vld [vmem:[%s4096_s6 + $0xf8] sm:$0xf0]  ;;  %v2889_v7 = vor.u32 %v3147_v1, %v2886_v2  ;;  %v1349_v19 = vld [vmem:[#allocation2] sm:$0xff] }
 0x2a1   : > { %1797 = vmatpush.bf16.msra.mxu1 %v3176_v34  ;;  %3432 = vmatpush.bf16.msra.mxu3 %v3176_v34  ;;  %v2925_v34 = vor.u32 %v3158_v28, %v2924_v27  ;;  %v2953_v8 = vor.u32 %v3163_v3, %v2950_v4  ;;  %v1364_v15 = vld [vmem:[#allocation2 + $0x38] sm:$0xff]  ;;  %v1368_v55 = vld [vmem:[#allocation2 + $0xe0] sm:$0xff]  ;;  %v1369_v1 = vld [vmem:[#allocation2 + $0x90] sm:$0xff] }
 0x2a2   : > { %v1365_v25 = vld [vmem:[#allocation2 + $0x58] sm:$0xff] }
 0x2a4   : > { %1709 = vmatpush.bf16.msra.mxu0 %v3167_v35  ;;  %3425 = vmatpush.bf16.msra.mxu2 %v3167_v35  ;;  %v2865_v35 = vor.u32 %v3141_v29, %v2862_v30  ;;  %v1350_v29 = vld [vmem:[#allocation2 + $0xd8] sm:$0xff] }
 0x2a5   : > { %1798 = vmatpush.bf16.msra.mxu1 %v3175_v36  ;;  %3433 = vmatpush.bf16.msra.mxu3 %v3175_v36  ;;  %v2929_v36 = vor.u32 %v3157_v31, %v2926_v32 }
 0x2a8   : > { %1710 = vmatpush.bf16.msra.mxu0 %v3166_v37  ;;  %3426 = vmatpush.bf16.msra.mxu2 %v3166_v37  ;;  %v2868_v37 = vld [vmem:[%s4096_s6 + $0x50] sm:$0xf] }
 0x2a9   : > { %1799 = vmatpush.bf16.msra.mxu1 %v3174_v38  ;;  %3434 = vmatpush.bf16.msra.mxu3 %v3174_v38  ;;  %v3144_v38 = vld [vmem:[%s4096_s6 + $0x54] sm:$0xf0] }
 0x2aa   : > { %v2869_v45 = vor.u32 %v3144_v38, %v2868_v37 }
 0x2ac   : > { %1711 = vmatpush.bf16.msra.mxu0 %v3165_v40  ;;  %3427 = vmatpush.bf16.msra.mxu2 %v3165_v40  ;;  %v3160_v40 = vld [vmem:[%s4096_s6 + $0xd4] sm:$0xf0] }
 0x2ad   : > { %1800 = vmatpush.bf16.msra.mxu1 %v3173_v41  ;;  %3435 = vmatpush.bf16.msra.mxu3 %v3173_v41  ;;  %v3143_v41 = vld [vmem:[%s4096_s6 + $0x54] sm:$0xf]  ;;  %v2933_v46 = vor.u32 %v3160_v40, %v2932_v39  ;;  %v1351_v39 = vld [vmem:[#allocation2 + $0x18] sm:$0xff] }
 0x2ae   : > { %v2873_v47 = vor.u32 %v3143_v41, %v2870_v42 }
 0x2af   : > { %1712 = vmatmul.bf16.vlgmr.msra.gmra.mxu0 %v2829_v49  ;;  %1752 = vmatmul.bf16.vlgmr.msra.gmra.mxu2 %v2893_v50  ;;  %v2876_v49 = vld [vmem:[%s4096_s6 + $0x60] sm:$0xf]  ;;  %v3146_v50 = vld [vmem:[%s4096_s6 + $0x64] sm:$0xf0] }
 0x2b0   : > { %1801 = vmatmul.bf16.vlgmr.msra.gmra.mxu1 %v2833_v51  ;;  %1841 = vmatmul.bf16.vlgmr.msra.gmra.mxu3 %v2897_v52  ;;  %v2940_v51 = vld [vmem:[%s4096_s6 + $0xe0] sm:$0xf]  ;;  %v3162_v52 = vld [vmem:[%s4096_s6 + $0xe4] sm:$0xf0]  ;;  %v2877_v57 = vor.u32 %v3146_v50, %v2876_v49  ;;  %v1352_v49 = vld [vmem:[#allocation2 + $0x50] sm:$0xff] }
 0x2b1   : > { %v2941_v58 = vor.u32 %v3162_v52, %v2940_v51 }
 0x2bf   : > { %1717 = vmatmul.bf16.gmra.mxu0 %v2837_v61  ;;  %1757 = vmatmul.bf16.gmra.mxu2 %v2901_v62  ;;  %v2884_v61 = vld [vmem:[%s4096_s6 + $0x70] sm:$0xf]  ;;  %v3148_v62 = vld [vmem:[%s4096_s6 + $0x74] sm:$0xf0] }
 0x2c0   : > { %1806 = vmatmul.bf16.gmra.mxu1 %v2841_v63  ;;  %1846 = vmatmul.bf16.gmra.mxu3 %v2905_v0  ;;  %v2948_v63 = vld [vmem:[%s4096_s6 + $0xf0] sm:$0xf]  ;;  %v3164_v0 = vld [vmem:[%s4096_s6 + $0xf4] sm:$0xf0]  ;;  %v2885_v5 = vor.u32 %v3148_v62, %v2884_v61 }
 0x2c1   : > { %v2949_v6 = vor.u32 %v3164_v0, %v2948_v63 }
 0x2cf   : > { %1722 = vmatmul.bf16.gmra.mxu0 %v2845_v9  ;;  %1762 = vmatmul.bf16.gmra.mxu2 %v2909_v10  ;;  %v1348_v10 = vld [vmem:[#allocation2 + $0xb0] sm:$0xff] }
 0x2d0   : > { %1811 = vmatmul.bf16.gmra.mxu1 %v2849_v11  ;;  %1851 = vmatmul.bf16.gmra.mxu3 %v2913_v12 }
 0x2df   : > { %1727 = vmatmul.bf16.gmra.mxu0 %v2853_v21  ;;  %1767 = vmatmul.bf16.gmra.mxu2 %v2917_v22 }
 0x2e0   : > { %1816 = vmatmul.bf16.gmra.mxu1 %v2857_v23  ;;  %1856 = vmatmul.bf16.gmra.mxu3 %v2921_v24 }
 0x2ef   : > { %1732 = vmatmul.bf16.gmra.mxu0 %v2861_v33  ;;  %1772 = vmatmul.bf16.gmra.mxu2 %v2925_v34 }
 0x2f0   : > { %1821 = vmatmul.bf16.gmra.mxu1 %v2865_v35  ;;  %1861 = vmatmul.bf16.gmra.mxu3 %v2929_v36  ;;  %v1366_v35 = vld [vmem:[#allocation2 + $0x40] sm:$0xff] }
 0x2ff   : > { %1737 = vmatmul.bf16.gmra.mxu0 %v2869_v45  ;;  %1777 = vmatmul.bf16.gmra.mxu2 %v2933_v46  ;;  %v1367_v45 = vld [vmem:[#allocation2 + $0xc8] sm:$0xff] }
 0x300   : > { %1826 = vmatmul.bf16.gmra.mxu1 %v2873_v47  ;;  %1866 = vmatmul.bf16.gmra.mxu3 %v2937_v48 }
 0x30f   : > { %1742 = vmatmul.bf16.gmra.mxu0 %v2877_v57  ;;  %1782 = vmatmul.bf16.gmra.mxu2 %v2941_v58 }
 0x310   : > { %1831 = vmatmul.bf16.gmra.mxu1 %v2881_v59  ;;  %1871 = vmatmul.bf16.gmra.mxu3 %v2945_v60  ;;  %v1353_v59 = vld [vmem:[#allocation2 + $0x68] sm:$0xff] }
 0x31f   : > { %1747 = vmatmul.bf16.gmra.mxu0 %v2885_v5  ;;  %1787 = vmatmul.bf16.gmra.mxu2 %v2949_v6  ;;  %v1354_v5 = vld [vmem:[#allocation2 + $0x30] sm:$0xff] }
 0x320   : > { %1836 = vmatmul.bf16.gmra.mxu1 %v2889_v7  ;;  %1876 = vmatmul.bf16.gmra.mxu3 %v2953_v8 }
 0x32c   : > { %v1713_v9 = vpop.f32.mrf.mxu0 }
 0x32d   : > { %v1802_v11 = vpop.f32.mrf.mxu1 }
 0x32e   : > { %v1803_v12 = vadd.f32 %v1802_v11, %v1713_v9  ;;  %v1370_v11 = vld [vmem:[#allocation2 + $0x70] sm:$0xff] }
 0x330   : > { %v1882_v13 = vadd.f32 %v1803_v12, %v1348_v10 }
 0x332   : > { %1914 = vst [vmem:[#allocation2 + $0xb0] sm:$0xff] %v1882_v13  ;;  %v1753_v14 = vpop.f32.mrf.mxu2 }
 0x333   : > { %v1842_v16 = vpop.f32.mrf.mxu3 }
 0x334   : > { %v1843_v17 = vadd.f32 %v1842_v16, %v1753_v14  ;;  %v1715_v18 = vpop.f32.mrf.mxu0 }
 0x335   : > { %v1804_v20 = vpop.f32.mrf.mxu1 }
 0x336   : > { %v1898_v21 = vadd.f32 %v1843_v17, %v1364_v15  ;;  %v1805_v22 = vadd.f32 %v1804_v20, %v1715_v18  ;;  %v1355_v15 = vld [vmem:[#allocation2 + $0x48] sm:$0xff] }
 0x338   : > { %1930 = vst [vmem:[#allocation2 + $0x38] sm:$0xff] %v1898_v21  ;;  %v1883_v23 = vadd.f32 %v1805_v22, %v1349_v19  ;;  %v1371_v21 = vld [vmem:[#allocation2 + $0xc0] sm:$0xff] }
 0x33a   : > { %1915 = vst [vmem:[#allocation2] sm:$0xff] %v1883_v23  ;;  %v1755_v24 = vpop.f32.mrf.mxu2 }
 0x33b   : > { %v1844_v26 = vpop.f32.mrf.mxu3 }
 0x33c   : > { %v1845_v27 = vadd.f32 %v1844_v26, %v1755_v24  ;;  %v1718_v28 = vpop.f32.mrf.mxu0 }
 0x33d   : > { %v1807_v30 = vpop.f32.mrf.mxu1 }
 0x33e   : > { %v1899_v31 = vadd.f32 %v1845_v27, %v1365_v25  ;;  %v1808_v32 = vadd.f32 %v1807_v30, %v1718_v28  ;;  %v1356_v25 = vld [vmem:[#allocation2 + $0x80] sm:$0xff] }
 0x340   : > { %1931 = vst [vmem:[#allocation2 + $0x58] sm:$0xff] %v1899_v31  ;;  %v1884_v33 = vadd.f32 %v1808_v32, %v1350_v29  ;;  %v1372_v31 = vld [vmem:[#allocation2 + $0xa8] sm:$0xff] }
 0x342   : > { %1916 = vst [vmem:[#allocation2 + $0xd8] sm:$0xff] %v1884_v33  ;;  %v1758_v34 = vpop.f32.mrf.mxu2 }
 0x343   : > { %v1847_v36 = vpop.f32.mrf.mxu3 }
 0x344   : > { %v1848_v37 = vadd.f32 %v1847_v36, %v1758_v34  ;;  %v1720_v38 = vpop.f32.mrf.mxu0 }
 0x345   : > { %v1809_v40 = vpop.f32.mrf.mxu1 }
 0x346   : > { %v1900_v41 = vadd.f32 %v1848_v37, %v1366_v35  ;;  %v1810_v42 = vadd.f32 %v1809_v40, %v1720_v38  ;;  %v1357_v35 = vld [vmem:[#allocation2 + $0x88] sm:$0xff] }
 0x348   : > { %1932 = vst [vmem:[#allocation2 + $0x40] sm:$0xff] %v1900_v41  ;;  %v1885_v43 = vadd.f32 %v1810_v42, %v1351_v39  ;;  %v1373_v41 = vld [vmem:[#allocation2 + $0xd0] sm:$0xff] }
 0x34a   : > { %1917 = vst [vmem:[#allocation2 + $0x18] sm:$0xff] %v1885_v43  ;;  %v1760_v44 = vpop.f32.mrf.mxu2 }
 0x34b   : > { %v1849_v46 = vpop.f32.mrf.mxu3 }
 0x34c   : > { %v1850_v47 = vadd.f32 %v1849_v46, %v1760_v44  ;;  %v1723_v48 = vpop.f32.mrf.mxu0 }
 0x34d   : > { %v1812_v50 = vpop.f32.mrf.mxu1 }
 0x34e   : > { %v1901_v51 = vadd.f32 %v1850_v47, %v1367_v45  ;;  %v1813_v52 = vadd.f32 %v1812_v50, %v1723_v48  ;;  %v1358_v45 = vld [vmem:[#allocation2 + $0xe8] sm:$0xff] }
 0x350   : > { %1933 = vst [vmem:[#allocation2 + $0xc8] sm:$0xff] %v1901_v51  ;;  %v1886_v53 = vadd.f32 %v1813_v52, %v1352_v49  ;;  %v1374_v51 = vld [vmem:[#allocation2 + $0x10] sm:$0xff] }
 0x352   : > { %1918 = vst [vmem:[#allocation2 + $0x50] sm:$0xff] %v1886_v53  ;;  %v1763_v54 = vpop.f32.mrf.mxu2 }
 0x353   : > { %v1852_v56 = vpop.f32.mrf.mxu3 }
 0x354   : > { %v1853_v57 = vadd.f32 %v1852_v56, %v1763_v54  ;;  %v1725_v58 = vpop.f32.mrf.mxu0 }
 0x355   : > { %v1814_v60 = vpop.f32.mrf.mxu1 }
 0x356   : > { %v1902_v61 = vadd.f32 %v1853_v57, %v1368_v55  ;;  %v1815_v62 = vadd.f32 %v1814_v60, %v1725_v58  ;;  %v1359_v55 = vld [vmem:[#allocation2 + $0xb8] sm:$0xff] }
 0x358   : > { %1934 = vst [vmem:[#allocation2 + $0xe0] sm:$0xff] %v1902_v61  ;;  %v1887_v63 = vadd.f32 %v1815_v62, %v1353_v59  ;;  %v1375_v61 = vld [vmem:[#allocation2 + $0x28] sm:$0xff] }
 0x35a   : > { %1919 = vst [vmem:[#allocation2 + $0x68] sm:$0xff] %v1887_v63  ;;  %v1765_v0 = vpop.f32.mrf.mxu2 }
 0x35b   : > { %v1854_v2 = vpop.f32.mrf.mxu3 }
 0x35c   : > { %v1855_v3 = vadd.f32 %v1854_v2, %v1765_v0  ;;  %v1728_v4 = vpop.f32.mrf.mxu0 }
 0x35d   : > { %v1817_v6 = vpop.f32.mrf.mxu1 }
 0x35e   : > { %v1903_v7 = vadd.f32 %v1855_v3, %v1369_v1  ;;  %v1818_v8 = vadd.f32 %v1817_v6, %v1728_v4  ;;  %v1360_v1 = vld [vmem:[#allocation2 + $0x60] sm:$0xff] }
 0x360   : > { %1935 = vst [vmem:[#allocation2 + $0x90] sm:$0xff] %v1903_v7  ;;  %v1888_v9 = vadd.f32 %v1818_v8, %v1354_v5  ;;  %v1376_v7 = vld [vmem:[#allocation2 + $0xa0] sm:$0xff] }
 0x362   : > { %1920 = vst [vmem:[#allocation2 + $0x30] sm:$0xff] %v1888_v9  ;;  %v1768_v10 = vpop.f32.mrf.mxu2 }
 0x363   : > { %v1857_v12 = vpop.f32.mrf.mxu3 }
 0x364   : > { %v1858_v13 = vadd.f32 %v1857_v12, %v1768_v10  ;;  %v1730_v14 = vpop.f32.mrf.mxu0 }
 0x365   : > { %v1819_v16 = vpop.f32.mrf.mxu1 }
 0x366   : > { %v1904_v17 = vadd.f32 %v1858_v13, %v1370_v11  ;;  %v1820_v18 = vadd.f32 %v1819_v16, %v1730_v14  ;;  %v1361_v11 = vld [vmem:[#allocation2 + $0xf0] sm:$0xff] }
 0x368   : > { %1936 = vst [vmem:[#allocation2 + $0x70] sm:$0xff] %v1904_v17  ;;  %v1889_v19 = vadd.f32 %v1820_v18, %v1355_v15  ;;  %v1377_v17 = vld [vmem:[#allocation2 + $0xf8] sm:$0xff] }
 0x36a   : > { %1921 = vst [vmem:[#allocation2 + $0x48] sm:$0xff] %v1889_v19  ;;  %v1770_v20 = vpop.f32.mrf.mxu2 }
 0x36b   : > { %v1859_v22 = vpop.f32.mrf.mxu3 }
 0x36c   : > { %v1860_v23 = vadd.f32 %v1859_v22, %v1770_v20  ;;  %v1733_v24 = vpop.f32.mrf.mxu0 }
 0x36d   : > { %v1822_v26 = vpop.f32.mrf.mxu1 }
 0x36e   : > { %v1905_v27 = vadd.f32 %v1860_v23, %v1371_v21  ;;  %v1823_v28 = vadd.f32 %v1822_v26, %v1733_v24  ;;  %v1362_v21 = vld [vmem:[#allocation2 + $0x8] sm:$0xff] }
 0x370   : > { %1937 = vst [vmem:[#allocation2 + $0xc0] sm:$0xff] %v1905_v27  ;;  %v1890_v29 = vadd.f32 %v1823_v28, %v1356_v25  ;;  %v1378_v27 = vld [vmem:[#allocation2 + $0x20] sm:$0xff] }
 0x372   : > { %1922 = vst [vmem:[#allocation2 + $0x80] sm:$0xff] %v1890_v29  ;;  %v1773_v30 = vpop.f32.mrf.mxu2 }
 0x373   : > { %v1862_v32 = vpop.f32.mrf.mxu3 }
 0x374   : > { %v1863_v33 = vadd.f32 %v1862_v32, %v1773_v30  ;;  %v1735_v34 = vpop.f32.mrf.mxu0 }
 0x375   : > { %v1824_v36 = vpop.f32.mrf.mxu1 }
 0x376   : > { %v1906_v37 = vadd.f32 %v1863_v33, %v1372_v31  ;;  %v1825_v38 = vadd.f32 %v1824_v36, %v1735_v34  ;;  %v1363_v31 = vld [vmem:[#allocation2 + $0x78] sm:$0xff] }
 0x378   : > { %1938 = vst [vmem:[#allocation2 + $0xa8] sm:$0xff] %v1906_v37  ;;  %v1891_v39 = vadd.f32 %v1825_v38, %v1357_v35  ;;  %v1379_v37 = vld [vmem:[#allocation2 + $0x98] sm:$0xff] }
 0x37a   : > { %1923 = vst [vmem:[#allocation2 + $0x88] sm:$0xff] %v1891_v39  ;;  %v1775_v40 = vpop.f32.mrf.mxu2 }
 0x37b   : > { %v1864_v42 = vpop.f32.mrf.mxu3 }
 0x37c   : > { %v1865_v43 = vadd.f32 %v1864_v42, %v1775_v40  ;;  %v1738_v44 = vpop.f32.mrf.mxu0 }
 0x37d   : > { %v1827_v46 = vpop.f32.mrf.mxu1 }
 0x37e   : > { %v1907_v47 = vadd.f32 %v1865_v43, %v1373_v41  ;;  %v1828_v48 = vadd.f32 %v1827_v46, %v1738_v44 }
 0x380   : > { %1939 = vst [vmem:[#allocation2 + $0xd0] sm:$0xff] %v1907_v47  ;;  %v1892_v49 = vadd.f32 %v1828_v48, %v1358_v45 }
 0x382   : > { %1924 = vst [vmem:[#allocation2 + $0xe8] sm:$0xff] %v1892_v49  ;;  %v1778_v50 = vpop.f32.mrf.mxu2 }
 0x383   : > { %v1867_v52 = vpop.f32.mrf.mxu3 }
 0x384   : > { %v1868_v53 = vadd.f32 %v1867_v52, %v1778_v50  ;;  %v1740_v54 = vpop.f32.mrf.mxu0 }
 0x385   : > { %v1829_v56 = vpop.f32.mrf.mxu1 }
 0x386   : > { %v1908_v57 = vadd.f32 %v1868_v53, %v1374_v51  ;;  %v1830_v58 = vadd.f32 %v1829_v56, %v1740_v54 }
 0x388   : > { %1940 = vst [vmem:[#allocation2 + $0x10] sm:$0xff] %v1908_v57  ;;  %v1893_v59 = vadd.f32 %v1830_v58, %v1359_v55 }
 0x38a   : > { %1925 = vst [vmem:[#allocation2 + $0xb8] sm:$0xff] %v1893_v59  ;;  %v1780_v60 = vpop.f32.mrf.mxu2 }
 0x38b   : > { %v1869_v62 = vpop.f32.mrf.mxu3 }
 0x38c   : > { %v1870_v63 = vadd.f32 %v1869_v62, %v1780_v60  ;;  %v1743_v0 = vpop.f32.mrf.mxu0 }
 0x38d   : > { %v1832_v2 = vpop.f32.mrf.mxu1 }
 0x38e   : > { %v1909_v3 = vadd.f32 %v1870_v63, %v1375_v61  ;;  %v1833_v4 = vadd.f32 %v1832_v2, %v1743_v0 }
 0x390   : > { %1941 = vst [vmem:[#allocation2 + $0x28] sm:$0xff] %v1909_v3  ;;  %v1894_v5 = vadd.f32 %v1833_v4, %v1360_v1 }
 0x392   : > { %1926 = vst [vmem:[#allocation2 + $0x60] sm:$0xff] %v1894_v5  ;;  %v1783_v6 = vpop.f32.mrf.mxu2 }
 0x393   : > { %v1872_v8 = vpop.f32.mrf.mxu3 }
 0x394   : > { %v1873_v9 = vadd.f32 %v1872_v8, %v1783_v6  ;;  %v1745_v10 = vpop.f32.mrf.mxu0 }
 0x395   : > { %v1834_v12 = vpop.f32.mrf.mxu1 }
 0x396   : > { %v1910_v13 = vadd.f32 %v1873_v9, %v1376_v7  ;;  %v1835_v14 = vadd.f32 %v1834_v12, %v1745_v10 }
 0x398   : > { %1942 = vst [vmem:[#allocation2 + $0xa0] sm:$0xff] %v1910_v13  ;;  %v1895_v15 = vadd.f32 %v1835_v14, %v1361_v11 }
 0x39a   : > { %1927 = vst [vmem:[#allocation2 + $0xf0] sm:$0xff] %v1895_v15  ;;  %v1785_v16 = vpop.f32.mrf.mxu2 }
 0x39b   : > { %v1874_v18 = vpop.f32.mrf.mxu3 }
 0x39c   : > { %v1875_v19 = vadd.f32 %v1874_v18, %v1785_v16  ;;  %v1748_v20 = vpop.f32.mrf.mxu0 }
 0x39d   : > { %v1837_v22 = vpop.f32.mrf.mxu1 }
 0x39e   : > { %v1911_v23 = vadd.f32 %v1875_v19, %v1377_v17  ;;  %v1838_v24 = vadd.f32 %v1837_v22, %v1748_v20 }
 0x3a0   : > { %1943 = vst [vmem:[#allocation2 + $0xf8] sm:$0xff] %v1911_v23  ;;  %v1896_v25 = vadd.f32 %v1838_v24, %v1362_v21 }
 0x3a2   : > { %1928 = vst [vmem:[#allocation2 + $0x8] sm:$0xff] %v1896_v25  ;;  %v1788_v26 = vpop.f32.mrf.mxu2 }
 0x3a3   : > { %v1877_v28 = vpop.f32.mrf.mxu3 }
 0x3a4   : > { %v1878_v29 = vadd.f32 %v1877_v28, %v1788_v26  ;;  %v1750_v30 = vpop.f32.mrf.mxu0 }
 0x3a5   : > { %v1839_v32 = vpop.f32.mrf.mxu1 }
 0x3a6   : > { %v1912_v33 = vadd.f32 %v1878_v29, %v1378_v27  ;;  %v1840_v34 = vadd.f32 %v1839_v32, %v1750_v30 }
 0x3a8   : > { %1944 = vst [vmem:[#allocation2 + $0x20] sm:$0xff] %v1912_v33  ;;  %v1897_v35 = vadd.f32 %v1840_v34, %v1363_v31 }
 0x3aa   : > { %1929 = vst [vmem:[#allocation2 + $0x78] sm:$0xff] %v1897_v35  ;;  %v1790_v36 = vpop.f32.mrf.mxu2 }
 0x3ab   : > { %v1879_v38 = vpop.f32.mrf.mxu3 }
 0x3ac   : > { %v1880_v39 = vadd.f32 %v1879_v38, %v1790_v36 }
 0x3ae   : > { %v1913_v40 = vadd.f32 %v1880_v39, %v1379_v37 }
 0x3b0   : > { %1945 = vst [vmem:[#allocation2 + $0x98] sm:$0xff] %v1913_v40 }
 0x3b1 PF: > { %p3018_p4 = scmp.ne.s32.totalorder %s3861_s27, 1 }
 0x3b2   : > { %s3019_s24 = sshll.u32 (!%p3018_p4), %s3865_s28, 8 }
 0x3b3   : > { %1949 = sbr.rel (%p3018_p4) target bundleno = 1227 (0x4cb), region = 80 }
 0x3b8   : > { %1953 = sbr.rel (%p2529_p1) target bundleno = 1186 (0x4a2), region = 84  ;;  %s4576_s5 = sld [smem:[#allocation30_spill]] (!%p2529_p1) }
 0x3b9   : > { %s2223_s19 = sshra.s32 (!%p2529_p1), %s3019_s24, 3 }
 0x3ba   : > { %s3053_s6 = sshll.u32 (!%p2529_p1), %s2223_s19, 2 }
 0x3bb   : > { %s4353_s26 = scalar_lea.vmem (!%p2529_p1), [#allocation3], %s3053_s6 }
 0x3bd   : > { %v3188_v41 = vld [vmem:[#allocation10 + $0x38] sm:$0xff]  ;;  %v3187_v42 = vld [vmem:[#allocation10 + $0x30] sm:$0xff]  ;;  %v3186_v43 = vld [vmem:[#allocation10 + $0x28] sm:$0xff] }
 0x3be   : > { %2070 = vmatpush.bf16.msra.mxu0 %v3188_v41  ;;  %3436 = vmatpush.bf16.msra.mxu1 %v3188_v41  ;;  %v3185_v44 = vld [vmem:[#allocation10 + $0x20] sm:$0xff]  ;;  %v3184_v45 = vld [vmem:[#allocation10 + $0x18] sm:$0xff]  ;;  %v3183_v46 = vld [vmem:[#allocation10 + $0x10] sm:$0xff] }
 0x3bf   : > { %3437 = vmatpush.bf16.msra.mxu2 %v3188_v41  ;;  %3438 = vmatpush.bf16.msra.mxu3 %v3188_v41  ;;  %v3182_v47 = vld [vmem:[#allocation10 + $0x8] sm:$0xff]  ;;  %v3181_v48 = vld [vmem:[#allocation10] sm:$0xff]  ;;  %v1954_v49 = vld [vmem:[#allocation2 + $0xb0] sm:$0xff] }
 0x3c0   : > { %v1955_v50 = vld [vmem:[#allocation2] sm:$0xff]  ;;  %v1963_v52 = vld [vmem:[#allocation2 + $0x88] sm:$0xff]  ;;  %v1970_v53 = vld [vmem:[#allocation2 + $0x38] sm:$0xff] }
 0x3c1   : > { %v1962_v51 = vld [vmem:[#allocation2 + $0x80] sm:$0xff]  ;;  %v1971_v54 = vld [vmem:[#allocation2 + $0x58] sm:$0xff]  ;;  %v1978_v55 = vld [vmem:[#allocation2 + $0xa8] sm:$0xff]  ;;  %v1986_v57 = vpack.c.bf16 %v1955_v50, %v1954_v49 }
 0x3c2   : > { %2071 = vmatpush.bf16.msra.mxu0 %v3187_v42  ;;  %3439 = vmatpush.bf16.msra.mxu1 %v3187_v42  ;;  %v1979_v56 = vld [vmem:[#allocation2 + $0xd0] sm:$0xff]  ;;  %v1990_v58 = vpack.c.bf16 %v1963_v52, %v1962_v51  ;;  %v1994_v59 = vpack.c.bf16 %v1971_v54, %v1970_v53  ;;  %v1956_v61 = vld [vmem:[#allocation2 + $0xd8] sm:$0xff]  ;;  %v1964_v63 = vld [vmem:[#allocation2 + $0xe8] sm:$0xff] }
 0x3c3   : > { %3440 = vmatpush.bf16.msra.mxu2 %v3187_v42  ;;  %3441 = vmatpush.bf16.msra.mxu3 %v3187_v42  ;;  %v1998_v60 = vpack.c.bf16 %v1979_v56, %v1978_v55  ;;  %v1957_v62 = vld [vmem:[#allocation2 + $0x18] sm:$0xff]  ;;  %v1972_v1 = vld [vmem:[#allocation2 + $0x40] sm:$0xff]  ;;  %v1973_v2 = vld [vmem:[#allocation2 + $0xc8] sm:$0xff] }
 0x3c4   : > { %v1965_v0 = vld [vmem:[#allocation2 + $0xb8] sm:$0xff]  ;;  %v1980_v3 = vld [vmem:[#allocation2 + $0x10] sm:$0xff]  ;;  %v1981_v4 = vld [vmem:[#allocation2 + $0x28] sm:$0xff]  ;;  %v1987_v5 = vpack.c.bf16 %v1957_v62, %v1956_v61  ;;  %v1995_v7 = vpack.c.bf16 %v1973_v2, %v1972_v1 }
 0x3c5   : > { %v1991_v6 = vpack.c.bf16 %v1965_v0, %v1964_v63  ;;  %v1999_v8 = vpack.c.bf16 %v1981_v4, %v1980_v3  ;;  %v1958_v9 = vld [vmem:[#allocation2 + $0x50] sm:$0xff]  ;;  %v1959_v10 = vld [vmem:[#allocation2 + $0x68] sm:$0xff]  ;;  %v1966_v11 = vld [vmem:[#allocation2 + $0x60] sm:$0xff] }
 0x3c6   : > { %2072 = vmatpush.bf16.msra.mxu0 %v3186_v43  ;;  %3442 = vmatpush.bf16.msra.mxu1 %v3186_v43  ;;  %v1967_v12 = vld [vmem:[#allocation2 + $0xf0] sm:$0xff]  ;;  %v1974_v13 = vld [vmem:[#allocation2 + $0xe0] sm:$0xff]  ;;  %v1983_v16 = vld [vmem:[#allocation2 + $0xf8] sm:$0xff]  ;;  %v1988_v17 = vpack.c.bf16 %v1959_v10, %v1958_v9 }
 0x3c7   : > { %3443 = vmatpush.bf16.msra.mxu2 %v3186_v43  ;;  %3444 = vmatpush.bf16.msra.mxu3 %v3186_v43  ;;  %v1975_v14 = vld [vmem:[#allocation2 + $0x90] sm:$0xff]  ;;  %v1982_v15 = vld [vmem:[#allocation2 + $0xa0] sm:$0xff]  ;;  %v1992_v18 = vpack.c.bf16 %v1967_v12, %v1966_v11  ;;  %v1961_v22 = vld [vmem:[#allocation2 + $0x48] sm:$0xff] }
 0x3c8   : > { %v1996_v19 = vpack.c.bf16 %v1975_v14, %v1974_v13  ;;  %v2000_v20 = vpack.c.bf16 %v1983_v16, %v1982_v15  ;;  %v1960_v21 = vld [vmem:[#allocation2 + $0x30] sm:$0xff]  ;;  %v1968_v23 = vld [vmem:[#allocation2 + $0x8] sm:$0xff]  ;;  %v1969_v24 = vld [vmem:[#allocation2 + $0x78] sm:$0xff] }
 0x3c9   : > { %v1976_v25 = vld [vmem:[#allocation2 + $0x70] sm:$0xff]  ;;  %v1977_v26 = vld [vmem:[#allocation2 + $0xc0] sm:$0xff]  ;;  %v1985_v28 = vld [vmem:[#allocation2 + $0x98] sm:$0xff]  ;;  %v1989_v29 = vpack.c.bf16 %v1961_v22, %v1960_v21  ;;  %v1993_v30 = vpack.c.bf16 %v1969_v24, %v1968_v23 }
 0x3ca   : > { %2073 = vmatpush.bf16.msra.mxu0 %v3185_v44  ;;  %3445 = vmatpush.bf16.msra.mxu1 %v3185_v44  ;;  %v1984_v27 = vld [vmem:[#allocation2 + $0x20] sm:$0xff]  ;;  %v1997_v31 = vpack.c.bf16 %v1977_v26, %v1976_v25 }
 0x3cb   : > { %3446 = vmatpush.bf16.msra.mxu2 %v3185_v44  ;;  %3447 = vmatpush.bf16.msra.mxu3 %v3185_v44  ;;  %v2001_v32 = vpack.c.bf16 %v1985_v28, %v1984_v27  ;;  %v4343_v35 = vld [vmem:[%s4576_s5] ss:$0 sm:$0xff] }
 0x3ce   : > { %2074 = vmatpush.bf16.msra.mxu0 %v3184_v45  ;;  %3448 = vmatpush.bf16.msra.mxu1 %v3184_v45 }
 0x3cf   : > { %3449 = vmatpush.bf16.msra.mxu2 %v3184_v45  ;;  %3450 = vmatpush.bf16.msra.mxu3 %v3184_v45 }
 0x3d2   : > { %2075 = vmatpush.bf16.msra.mxu0 %v3183_v46  ;;  %3451 = vmatpush.bf16.msra.mxu1 %v3183_v46 }
 0x3d3   : > { %3452 = vmatpush.bf16.msra.mxu2 %v3183_v46  ;;  %3453 = vmatpush.bf16.msra.mxu3 %v3183_v46 }
 0x3d6   : > { %2076 = vmatpush.bf16.msra.mxu0 %v3182_v47  ;;  %3454 = vmatpush.bf16.msra.mxu1 %v3182_v47 }
 0x3d7   : > { %3455 = vmatpush.bf16.msra.mxu2 %v3182_v47  ;;  %3456 = vmatpush.bf16.msra.mxu3 %v3182_v47 }
 0x3da   : > { %2077 = vmatpush.bf16.msra.mxu0 %v3181_v48  ;;  %3457 = vmatpush.bf16.msra.mxu1 %v3181_v48 }
 0x3db   : > { %3458 = vmatpush.bf16.msra.mxu2 %v3181_v48  ;;  %3459 = vmatpush.bf16.msra.mxu3 %v3181_v48 }
 0x3dd   : > { %2078 = vmatmul.bf16.vlgmr.msra.gmra.mxu0 %v1986_v57  ;;  %2098 = vmatmul.bf16.vlgmr.msra.gmra.mxu1 %v1990_v58 }
 0x3de   : > { %2118 = vmatmul.bf16.vlgmr.msra.gmra.mxu2 %v1994_v59  ;;  %2138 = vmatmul.bf16.vlgmr.msra.gmra.mxu3 %v1998_v60 }
 0x3ed   : > { %2083 = vmatmul.bf16.gmra.mxu0 %v1987_v5  ;;  %2103 = vmatmul.bf16.gmra.mxu1 %v1991_v6 }
 0x3ee   : > { %2123 = vmatmul.bf16.gmra.mxu2 %v1995_v7  ;;  %2143 = vmatmul.bf16.gmra.mxu3 %v1999_v8 }
 0x3fd   : > { %2088 = vmatmul.bf16.gmra.mxu0 %v1988_v17  ;;  %2108 = vmatmul.bf16.gmra.mxu1 %v1992_v18 }
 0x3fe   : > { %2128 = vmatmul.bf16.gmra.mxu2 %v1996_v19  ;;  %2148 = vmatmul.bf16.gmra.mxu3 %v2000_v20 }
 0x40d   : > { %2093 = vmatmul.bf16.gmra.mxu0 %v1989_v29  ;;  %2113 = vmatmul.bf16.gmra.mxu1 %v1993_v30 }
 0x40e   : > { %2133 = vmatmul.bf16.gmra.mxu2 %v1997_v31  ;;  %2153 = vmatmul.bf16.gmra.mxu3 %v2001_v32 }
 0x45a   : > { %v2079_v33 = vpop.f32.mrf.mxu0  ;;  %v2099_v34 = vpop.f32.mrf.mxu1 }
 0x45b   : > { %v2080_v36 = vadd.f32 %v4343_v35, %v2079_v33  ;;  %v2100_v37 = vadd.f32 %v4343_v35, %v2099_v34 }
 0x45d   : > { %v2159_v44 = vmax.f32 %v2080_v36, 0.0  ;;  %v2167_v45 = vmax.f32 %v2100_v37, 0.0 }
 0x461   : > { %v2119_v38 = vpop.f32.mrf.mxu2  ;;  %v2139_v39 = vpop.f32.mrf.mxu3 }
 0x462   : > { %v2081_v40 = vpop.f32.mrf.mxu0  ;;  %v2101_v41 = vpop.f32.mrf.mxu1  ;;  %v2120_v50 = vadd.f32 %v4343_v35, %v2119_v38  ;;  %v2140_v51 = vadd.f32 %v4343_v35, %v2139_v39 }
 0x463   : > { %v2082_v42 = vadd.f32 %v4343_v35, %v2081_v40  ;;  %v2102_v43 = vadd.f32 %v4343_v35, %v2101_v41 }
 0x464   : > { %v2175_v58 = vmax.f32 %v2120_v50, 0.0  ;;  %v2183_v59 = vmax.f32 %v2140_v51, 0.0 }
 0x465   : > { %v2160_v46 = vmax.f32 %v2082_v42, 0.0  ;;  %v2168_v47 = vmax.f32 %v2102_v43, 0.0 }
 0x467   : > { %v3273_v48 = vpack.c.bf16 %v2160_v46, %v2159_v44  ;;  %v3293_v49 = vpack.c.bf16 %v2168_v47, %v2167_v45 }
 0x469   : > { %3274 = vst [vmem:[%s4353_s26] sm:$0xff] %v3273_v48   ;;  %v2121_v52 = vpop.f32.mrf.mxu2  ;;  %v2141_v53 = vpop.f32.mrf.mxu3 }
 0x46a   : > { %3368 = vst [vmem:[%s4353_s26 + $0x20] sm:$0xff] %v3293_v49   ;;  %v2122_v54 = vadd.f32 %v4343_v35, %v2121_v52  ;;  %v2142_v55 = vadd.f32 %v4343_v35, %v2141_v53  ;;  %v2084_v56 = vpop.f32.mrf.mxu0  ;;  %v2104_v57 = vpop.f32.mrf.mxu1 }
 0x46b   : > { %v2085_v0 = vadd.f32 %v4343_v35, %v2084_v56  ;;  %v2105_v1 = vadd.f32 %v4343_v35, %v2104_v57 }
 0x46c   : > { %v2176_v60 = vmax.f32 %v2122_v54, 0.0  ;;  %v2184_v61 = vmax.f32 %v2142_v55, 0.0 }
 0x46d   : > { %v2161_v8 = vmax.f32 %v2085_v0, 0.0  ;;  %v2169_v9 = vmax.f32 %v2105_v1, 0.0 }
 0x46e   : > { %v3313_v62 = vpack.c.bf16 %v2176_v60, %v2175_v58  ;;  %v3333_v63 = vpack.c.bf16 %v2184_v61, %v2183_v59 }
 0x470   : > { %3372 = vst [vmem:[%s4353_s26 + $0x40] sm:$0xff] %v3313_v62  }
 0x471   : > { %3376 = vst [vmem:[%s4353_s26 + $0x60] sm:$0xff] %v3333_v63   ;;  %v2124_v2 = vpop.f32.mrf.mxu2  ;;  %v2144_v3 = vpop.f32.mrf.mxu3 }
 0x472   : > { %v2086_v4 = vpop.f32.mrf.mxu0  ;;  %v2106_v5 = vpop.f32.mrf.mxu1  ;;  %v2125_v14 = vadd.f32 %v4343_v35, %v2124_v2  ;;  %v2145_v15 = vadd.f32 %v4343_v35, %v2144_v3 }
 0x473   : > { %v2087_v6 = vadd.f32 %v4343_v35, %v2086_v4  ;;  %v2107_v7 = vadd.f32 %v4343_v35, %v2106_v5 }
 0x474   : > { %v2177_v22 = vmax.f32 %v2125_v14, 0.0  ;;  %v2185_v23 = vmax.f32 %v2145_v15, 0.0 }
 0x475   : > { %v2162_v10 = vmax.f32 %v2087_v6, 0.0  ;;  %v2170_v11 = vmax.f32 %v2107_v7, 0.0 }
 0x477   : > { %v3278_v12 = vpack.c.bf16 %v2162_v10, %v2161_v8  ;;  %v3298_v13 = vpack.c.bf16 %v2170_v11, %v2169_v9 }
 0x479   : > { %3365 = vst [vmem:[%s4353_s26 + $0x8] sm:$0xff] %v3278_v12   ;;  %v2126_v16 = vpop.f32.mrf.mxu2  ;;  %v2146_v17 = vpop.f32.mrf.mxu3 }
 0x47a   : > { %3369 = vst [vmem:[%s4353_s26 + $0x28] sm:$0xff] %v3298_v13   ;;  %v2127_v18 = vadd.f32 %v4343_v35, %v2126_v16  ;;  %v2147_v19 = vadd.f32 %v4343_v35, %v2146_v17  ;;  %v2089_v20 = vpop.f32.mrf.mxu0  ;;  %v2109_v21 = vpop.f32.mrf.mxu1 }
 0x47b   : > { %v2090_v28 = vadd.f32 %v4343_v35, %v2089_v20  ;;  %v2110_v29 = vadd.f32 %v4343_v35, %v2109_v21 }
 0x47c   : > { %v2178_v24 = vmax.f32 %v2127_v18, 0.0  ;;  %v2186_v25 = vmax.f32 %v2147_v19, 0.0 }
 0x47d   : > { %v2163_v37 = vmax.f32 %v2090_v28, 0.0  ;;  %v2171_v38 = vmax.f32 %v2110_v29, 0.0 }
 0x47e   : > { %v3318_v26 = vpack.c.bf16 %v2178_v24, %v2177_v22  ;;  %v3338_v27 = vpack.c.bf16 %v2186_v25, %v2185_v23 }
 0x480   : > { %3373 = vst [vmem:[%s4353_s26 + $0x48] sm:$0xff] %v3318_v26  }
 0x481   : > { %3377 = vst [vmem:[%s4353_s26 + $0x68] sm:$0xff] %v3338_v27   ;;  %v2129_v30 = vpop.f32.mrf.mxu2  ;;  %v2149_v31 = vpop.f32.mrf.mxu3 }
 0x482   : > { %v2091_v32 = vpop.f32.mrf.mxu0  ;;  %v2111_v33 = vpop.f32.mrf.mxu1  ;;  %v2130_v43 = vadd.f32 %v4343_v35, %v2129_v30  ;;  %v2150_v44 = vadd.f32 %v4343_v35, %v2149_v31 }
 0x483   : > { %v2092_v34 = vadd.f32 %v4343_v35, %v2091_v32  ;;  %v2112_v36 = vadd.f32 %v4343_v35, %v2111_v33 }
 0x484   : > { %v2179_v51 = vmax.f32 %v2130_v43, 0.0  ;;  %v2187_v52 = vmax.f32 %v2150_v44, 0.0 }
 0x485   : > { %v2164_v39 = vmax.f32 %v2092_v34, 0.0  ;;  %v2172_v40 = vmax.f32 %v2112_v36, 0.0 }
 0x487   : > { %v3283_v41 = vpack.c.bf16 %v2164_v39, %v2163_v37  ;;  %v3303_v42 = vpack.c.bf16 %v2172_v40, %v2171_v38 }
 0x489   : > { %3366 = vst [vmem:[%s4353_s26 + $0x10] sm:$0xff] %v3283_v41   ;;  %v2131_v45 = vpop.f32.mrf.mxu2  ;;  %v2151_v46 = vpop.f32.mrf.mxu3 }
 0x48a   : > { %3370 = vst [vmem:[%s4353_s26 + $0x30] sm:$0xff] %v3303_v42   ;;  %v2132_v47 = vadd.f32 %v4343_v35, %v2131_v45  ;;  %v2152_v48 = vadd.f32 %v4343_v35, %v2151_v46  ;;  %v2094_v49 = vpop.f32.mrf.mxu0  ;;  %v2114_v50 = vpop.f32.mrf.mxu1 }
 0x48b   : > { %v2095_v57 = vadd.f32 %v4343_v35, %v2094_v49  ;;  %v2115_v58 = vadd.f32 %v4343_v35, %v2114_v50 }
 0x48c   : > { %v2180_v53 = vmax.f32 %v2132_v47, 0.0  ;;  %v2188_v54 = vmax.f32 %v2152_v48, 0.0 }
 0x48d   : > { %v2165_v1 = vmax.f32 %v2095_v57, 0.0  ;;  %v2173_v2 = vmax.f32 %v2115_v58, 0.0 }
 0x48e   : > { %v3323_v55 = vpack.c.bf16 %v2180_v53, %v2179_v51  ;;  %v3343_v56 = vpack.c.bf16 %v2188_v54, %v2187_v52 }
 0x490   : > { %3374 = vst [vmem:[%s4353_s26 + $0x50] sm:$0xff] %v3323_v55  }
 0x491   : > { %3378 = vst [vmem:[%s4353_s26 + $0x70] sm:$0xff] %v3343_v56   ;;  %v2134_v59 = vpop.f32.mrf.mxu2  ;;  %v2154_v60 = vpop.f32.mrf.mxu3 }
 0x492   : > { %v2096_v61 = vpop.f32.mrf.mxu0  ;;  %v2116_v62 = vpop.f32.mrf.mxu1  ;;  %v2135_v7 = vadd.f32 %v4343_v35, %v2134_v59  ;;  %v2155_v8 = vadd.f32 %v4343_v35, %v2154_v60 }
 0x493   : > { %v2097_v63 = vadd.f32 %v4343_v35, %v2096_v61  ;;  %v2117_v0 = vadd.f32 %v4343_v35, %v2116_v62 }
 0x494   : > { %v2181_v13 = vmax.f32 %v2135_v7, 0.0  ;;  %v2189_v14 = vmax.f32 %v2155_v8, 0.0 }
 0x495   : > { %v2166_v3 = vmax.f32 %v2097_v63, 0.0  ;;  %v2174_v4 = vmax.f32 %v2117_v0, 0.0 }
 0x497   : > { %v3288_v5 = vpack.c.bf16 %v2166_v3, %v2165_v1  ;;  %v3308_v6 = vpack.c.bf16 %v2174_v4, %v2173_v2 }
 0x499   : > { %3367 = vst [vmem:[%s4353_s26 + $0x18] sm:$0xff] %v3288_v5   ;;  %v2136_v9 = vpop.f32.mrf.mxu2  ;;  %v2156_v10 = vpop.f32.mrf.mxu3 }
 0x49a   : > { %3371 = vst [vmem:[%s4353_s26 + $0x38] sm:$0xff] %v3308_v6   ;;  %v2137_v11 = vadd.f32 %v4343_v35, %v2136_v9  ;;  %v2157_v12 = vadd.f32 %v4343_v35, %v2156_v10 }
 0x49c   : > { %v2182_v15 = vmax.f32 %v2137_v11, 0.0  ;;  %v2190_v16 = vmax.f32 %v2157_v12, 0.0 }
 0x49e   : > { %v3328_v17 = vpack.c.bf16 %v2182_v15, %v2181_v13  ;;  %v3348_v18 = vpack.c.bf16 %v2190_v16, %v2189_v14 }
 0x4a0   : > { %3375 = vst [vmem:[%s4353_s26 + $0x58] sm:$0xff] %v3328_v17  }
 0x4a1   : > { %3379 = vst [vmem:[%s4353_s26 + $0x78] sm:$0xff] %v3348_v18  }
 0x4a2 PF: > { %2261 = sbr.rel (%p2724_p11) target bundleno = 1227 (0x4cb), region = 88  ;;  %s4577_s20 = sld [smem:[#allocation31_spill]] (!%p2724_p11) }
 0x4a7   : > { %v2262_v19 = vld [vmem:[#allocation2 + $0xb0] sm:$0xff]  ;;  %v2263_v35 = vld [vmem:[#allocation2] sm:$0xff]  ;;  %v2264_v21 = vld [vmem:[#allocation2 + $0xd8] sm:$0xff] }
 0x4a8   : > { %v4402_v20 = vld [vmem:[%s4577_s20] ss:$0 sm:$0xff]  ;;  %v2265_v22 = vld [vmem:[#allocation2 + $0x18] sm:$0xff]  ;;  %v2266_v26 = vld [vmem:[#allocation2 + $0x50] sm:$0xff] }
 0x4a9   : > { %v2298_v23 = vadd.f32 %v4402_v20, %v2262_v19  ;;  %v2299_v24 = vadd.f32 %v4402_v20, %v2263_v35  ;;  %v2300_v25 = vadd.f32 %v4402_v20, %v2264_v21  ;;  %v2267_v27 = vld [vmem:[#allocation2 + $0x68] sm:$0xff]  ;;  %v2301_v28 = vadd.f32 %v4402_v20, %v2265_v22  ;;  %v2268_v29 = vld [vmem:[#allocation2 + $0x30] sm:$0xff]  ;;  %v2270_v33 = vld [vmem:[#allocation2 + $0x80] sm:$0xff] }
 0x4aa   : > { %v2302_v30 = vadd.f32 %v4402_v20, %v2266_v26  ;;  %v2269_v31 = vld [vmem:[#allocation2 + $0x48] sm:$0xff]  ;;  %v2303_v32 = vadd.f32 %v4402_v20, %v2267_v27  ;;  %v2304_v34 = vadd.f32 %v4402_v20, %v2268_v29  ;;  %v2306_v39 = vadd.f32 %v4402_v20, %v2270_v33  ;;  %v2273_v40 = vld [vmem:[#allocation2 + $0xb8] sm:$0xff]  ;;  %v2274_v42 = vld [vmem:[#allocation2 + $0x60] sm:$0xff] }
 0x4ab   : > { %2330 = vst [vmem:[%s4113_s8] sm:$0xff] %v2298_v23  ;;  %v2271_v36 = vld [vmem:[#allocation2 + $0x88] sm:$0xff]  ;;  %v2305_v37 = vadd.f32 %v4402_v20, %v2269_v31  ;;  %v2275_v44 = vld [vmem:[#allocation2 + $0xf0] sm:$0xff]  ;;  %v2309_v45 = vadd.f32 %v4402_v20, %v2273_v40  ;;  %v2310_v47 = vadd.f32 %v4402_v20, %v2274_v42  ;;  %v2277_v48 = vld [vmem:[#allocation2 + $0x78] sm:$0xff] }
 0x4ac   : > { %2331 = vst [vmem:[%s4113_s8 + $0x8] sm:$0xff] %v2299_v24  ;;  %v2272_v38 = vld [vmem:[#allocation2 + $0xe8] sm:$0xff]  ;;  %v2307_v41 = vadd.f32 %v4402_v20, %v2271_v36  ;;  %v2311_v49 = vadd.f32 %v4402_v20, %v2275_v44  ;;  %v2278_v50 = vld [vmem:[#allocation2 + $0x38] sm:$0xff]  ;;  %v2313_v53 = vadd.f32 %v4402_v20, %v2277_v48  ;;  %v2280_v54 = vld [vmem:[#allocation2 + $0x40] sm:$0xff] }
 0x4ad   : > { %2332 = vst [vmem:[%s4113_s8 + $0x10] sm:$0xff] %v2300_v25  ;;  %v2308_v43 = vadd.f32 %v4402_v20, %v2272_v38  ;;  %v2276_v46 = vld [vmem:[#allocation2 + $0x8] sm:$0xff]  ;;  %v2279_v52 = vld [vmem:[#allocation2 + $0x58] sm:$0xff]  ;;  %v2314_v55 = vadd.f32 %v4402_v20, %v2278_v50  ;;  %v2282_v58 = vld [vmem:[#allocation2 + $0xe0] sm:$0xff]  ;;  %v2316_v59 = vadd.f32 %v4402_v20, %v2280_v54 }
 0x4ae   : > { %2333 = vst [vmem:[%s4113_s8 + $0x18] sm:$0xff] %v2301_v28  ;;  %v2312_v51 = vadd.f32 %v4402_v20, %v2276_v46  ;;  %v2281_v56 = vld [vmem:[#allocation2 + $0xc8] sm:$0xff]  ;;  %v2315_v57 = vadd.f32 %v4402_v20, %v2279_v52  ;;  %v2283_v60 = vld [vmem:[#allocation2 + $0x90] sm:$0xff]  ;;  %v2318_v63 = vadd.f32 %v4402_v20, %v2282_v58  ;;  %v2285_v0 = vld [vmem:[#allocation2 + $0xc0] sm:$0xff] }
 0x4af   : > { %2334 = vst [vmem:[%s4113_s8 + $0x20] sm:$0xff] %v2302_v30  ;;  %v2317_v61 = vadd.f32 %v4402_v20, %v2281_v56  ;;  %v2284_v62 = vld [vmem:[#allocation2 + $0x70] sm:$0xff]  ;;  %v2319_v1 = vadd.f32 %v4402_v20, %v2283_v60  ;;  %v2286_v2 = vld [vmem:[#allocation2 + $0xa8] sm:$0xff]  ;;  %v2321_v5 = vadd.f32 %v4402_v20, %v2285_v0  ;;  %v2290_v10 = vld [vmem:[#allocation2 + $0xa0] sm:$0xff] }
 0x4b0   : > { %2335 = vst [vmem:[%s4113_s8 + $0x28] sm:$0xff] %v2303_v32  ;;  %v2320_v3 = vadd.f32 %v4402_v20, %v2284_v62  ;;  %v2287_v4 = vld [vmem:[#allocation2 + $0xd0] sm:$0xff]  ;;  %v2322_v7 = vadd.f32 %v4402_v20, %v2286_v2  ;;  %v2289_v8 = vld [vmem:[#allocation2 + $0x28] sm:$0xff]  ;;  %v2291_v12 = vld [vmem:[#allocation2 + $0xf8] sm:$0xff]  ;;  %v2326_v15 = vadd.f32 %v4402_v20, %v2290_v10 }
 0x4b1   : > { %2336 = vst [vmem:[%s4113_s8 + $0x30] sm:$0xff] %v2304_v34  ;;  %v2288_v6 = vld [vmem:[#allocation2 + $0x10] sm:$0xff]  ;;  %v2323_v9 = vadd.f32 %v4402_v20, %v2287_v4  ;;  %v2325_v13 = vadd.f32 %v4402_v20, %v2289_v8  ;;  %v2292_v14 = vld [vmem:[#allocation2 + $0x20] sm:$0xff]  ;;  %v2293_v16 = vld [vmem:[#allocation2 + $0x98] sm:$0xff]  ;;  %v2327_v17 = vadd.f32 %v4402_v20, %v2291_v12 }
 0x4b2   : > { %2337 = vst [vmem:[%s4113_s8 + $0x38] sm:$0xff] %v2305_v37  ;;  %v2324_v11 = vadd.f32 %v4402_v20, %v2288_v6  ;;  %v2328_v18 = vadd.f32 %v4402_v20, %v2292_v14  ;;  %v2329_v19 = vadd.f32 %v4402_v20, %v2293_v16 }
 0x4b3   : > { %2338 = vst [vmem:[%s4113_s8 + $0x40] sm:$0xff] %v2306_v39 }
 0x4b4   : > { %2339 = vst [vmem:[%s4113_s8 + $0x48] sm:$0xff] %v2307_v41 }
 0x4b5   : > { %2340 = vst [vmem:[%s4113_s8 + $0x50] sm:$0xff] %v2308_v43 }
 0x4b6   : > { %2341 = vst [vmem:[%s4113_s8 + $0x58] sm:$0xff] %v2309_v45 }
 0x4b7   : > { %2342 = vst [vmem:[%s4113_s8 + $0x60] sm:$0xff] %v2310_v47 }
 0x4b8   : > { %2343 = vst [vmem:[%s4113_s8 + $0x68] sm:$0xff] %v2311_v49 }
 0x4b9   : > { %2344 = vst [vmem:[%s4113_s8 + $0x70] sm:$0xff] %v2312_v51 }
 0x4ba   : > { %2345 = vst [vmem:[%s4113_s8 + $0x78] sm:$0xff] %v2313_v53 }
 0x4bb   : > { %2346 = vst [vmem:[%s4113_s8 + $0x80] sm:$0xff] %v2314_v55 }
 0x4bc   : > { %2347 = vst [vmem:[%s4113_s8 + $0x88] sm:$0xff] %v2315_v57 }
 0x4bd   : > { %2348 = vst [vmem:[%s4113_s8 + $0x90] sm:$0xff] %v2316_v59 }
 0x4be   : > { %2349 = vst [vmem:[%s4113_s8 + $0x98] sm:$0xff] %v2317_v61 }
 0x4bf   : > { %2350 = vst [vmem:[%s4113_s8 + $0xa0] sm:$0xff] %v2318_v63 }
 0x4c0   : > { %2351 = vst [vmem:[%s4113_s8 + $0xa8] sm:$0xff] %v2319_v1 }
 0x4c1   : > { %2352 = vst [vmem:[%s4113_s8 + $0xb0] sm:$0xff] %v2320_v3 }
 0x4c2   : > { %2353 = vst [vmem:[%s4113_s8 + $0xb8] sm:$0xff] %v2321_v5 }
 0x4c3   : > { %2354 = vst [vmem:[%s4113_s8 + $0xc0] sm:$0xff] %v2322_v7 }
 0x4c4   : > { %2355 = vst [vmem:[%s4113_s8 + $0xc8] sm:$0xff] %v2323_v9 }
 0x4c5   : > { %2356 = vst [vmem:[%s4113_s8 + $0xd0] sm:$0xff] %v2324_v11 }
 0x4c6   : > { %2357 = vst [vmem:[%s4113_s8 + $0xd8] sm:$0xff] %v2325_v13 }
 0x4c7   : > { %2358 = vst [vmem:[%s4113_s8 + $0xe0] sm:$0xff] %v2326_v15 }
 0x4c8   : > { %2359 = vst [vmem:[%s4113_s8 + $0xe8] sm:$0xff] %v2327_v17 }
 0x4c9   : > { %2360 = vst [vmem:[%s4113_s8 + $0xf0] sm:$0xff] %v2328_v18 }
 0x4ca   : > { %2361 = vst [vmem:[%s4113_s8 + $0xf8] sm:$0xff] %v2329_v19 }
 0x4cb PF: > { %s3189_s15 = sshll.u32 %s3865_s28, 8  ;;  %s4579_s18 = sld [smem:[#allocation32_spill]] }
 0x4cc   : > { %s2375_s21 = sshll.u32 %s4113_s8, 4  ;;  %s2363_s17 = scalar_lea.sflag [#allocation7], %s343_s4  ;;  %s2376_s21 = int_to_ptr.vmem [resolvable:$true] %s2375_s21 }
 0x4d1   : > { %s2374_s16 = scalar_lea.hbm %s4579_s18, %s3189_s15  ;;  %s3759_s28 = scalar_lea.hbm %s4579_s18, 512 }
 0x4d2   : > { %s2377_s2 = sshll.u32 %s2374_s16, 4  ;;  %s2378_s2 = int_to_ptr.hbm [resolvable:$true] %s2377_s2 }
 0x4d3   : > { %s3753_s10 = sshra.s32 %s2378_s2, 4  ;;  %s3754_s10 = int_to_ptr.hbm [resolvable:$true] %s3753_s10 }
 0x4d4   : > { %s3755_s24 = scalar_lea.hbm %s3754_s10, 256  ;;  %p3760_p10 = scmp.lt.s32.totalorder %s3754_s10, %s4579_s18 }
 0x4d5   : > { %p3756_p5 = scmp.ne.s32.totalorder %s3754_s10, %s3755_s24  ;;  %p3761_p12 = scmp.lt.s32.totalorder %s3759_s28, %s3755_s24 }
 0x4d7   : > { %p3757_p6 = pnand %p3756_p5, %p4014_p7  ;;  %p3762_p13 = por %p3761_p12, %p3760_p10 }
 0x4d9   : > { %p3758_p8 = pneg %p3757_p6 }
 0x4db   : > { %p3763_p0 = pnand %p3762_p13, %p3758_p8 }
 0x4dd   : > { %3766 = shalt.err (!%p3763_p0)
}
 0x4de   : > { %s3896_s4 = smov 128   ;;  %s3897_s8 = smov 8  }
 0x4df   : > { %3474 = dma.vmem_to_hbm [thread:$0]  (%p4014_p7), %s2376_s21, 4096, %s2378_s2, %s2363_s17, %s3896_s4, %s3896_s4, %s3897_s8  }
 0x4e0 PF: > { %s4580_s6 = sld [smem:[#allocation18_spill]]  ;;  %p3501_p3 = scmp.ge.s32.totalorder %s3885_s9, 2 }
 0x4e2   : > { %p3491_p1 = pnand %p3501_p3, %p4019_p9 }
 0x4e4   : > { %p3492_p11 = pneg %p3491_p1 }
 0x4e6   : > { %s2392_s12 = sand.u32 1, %s4580_s6  }
 0x4e7   : > { %s2393_s14 = scalar_lea.sflag [#allocation7], %s2392_s12 }
 0x4e8   : > { %3832 = dma.done.wait (%p3492_p11), %s2393_s14, 4096  }
 0x4e9   : > { %3834 = vsyncadd (%p3492_p11), %s2393_s14, 4294963200  ;;  %s24_s9 = sadd.s32 1, %s3885_s9   ;;  %s4583_s29 = sld [smem:[#allocation19_spill]] }
 0x4ea   : > { %p4490_p2 = scmp.ge.s32.totalorder %s24_s9, 10   ;;  %s4584_s26 = sld [smem:[#allocation26_spill]] }
 0x4eb   : > { %s4585_s15 = sld [smem:[#allocation20_spill]]  ;;  %s4589_s21 = smov %s3841_s22 }
 0x4ec   : > { %s4586_s1 = sld [smem:[#allocation23_spill]]  ;;  %s4590_s22 = smov %s3845_s23 }
 0x4ed   : > { %s4587_s11 = sld [smem:[#allocation24_spill]]  ;;  %s4591_s23 = smov %s4082_s13 }
 0x4ee   : > { %s4588_s8 = sld [smem:[#allocation25_spill]]  ;;  %s4592_s24 = smov %s3853_s25 }
 0x4ef   : > { %s4593_s25 = smov %s4583_s29  ;;  %s4594_s27 = smov %s3873_s30 }
 0x4f0   : > { %s4595_s28 = smov %s3877_s7  ;;  %23 = sbr.rel (!%p4490_p2) target bundleno = 19 (0x13), region = 134 }
 0x4f1   : > { %s4596_s29 = smov %s4585_s15 }
 0x4f2   : > { %s4597_s30 = smov %s4586_s1 }
 0x4f3   : > { %s4598_s7 = smov %s4587_s11 }
 0x4f5   :  { %2399 = vsyncpa [#allocation6], 1 }
 0x4f6   :  { %2401 = vsyncpa [#allocation6 + $0x1], 1 }
 0x4f7   :  { %2402 = vsyncpa [#allocation9], 1 }
 0x4f8   :  { %2403 = vsyncpa [#allocation12], 1 }
 0x4f9   :  { %2404 = vsyncpa [#allocation7], 1 }
 0x4fa   :  { %2406 = vsyncpa [#allocation7 + $0x1], 1 }

</bundles_post_ra>
